<compile_context>
chip_gen: v7x
topology: tpu7x:2x2x1
jax: 0.10.0
libtpu: 0.0.40
codegen_flags: <defaults>
</compile_context>

<pallas_src>
import functools

import jax
import jax.numpy as jnp
from jax.experimental import pallas as pl
from jax.experimental.pallas import tpu as pltpu


def _fused_dilation_kernel(xpk_ref, wtap_ref, w1_ref, beff_ref, o_ref, *,
                           dilations, d_max, H, W, Cin, Cout, Wp):
    """One batch element per grid step; all dilation branches handled inside.

    xpk_ref : (1, Hp, Cin*Wp)   VMEM  zero-padded input, channels packed on lanes
                                      xpk[0, r, c*Wp + s] = x_pad[c, r, s]
    wtap_ref: (D*9, Cin*Wp)     VMEM  depthwise tap weights as lane rows
                                      wtap[d*9+ky*3+kx, c*Wp+w] = wd[d,c,ky,kx]
    w1_ref  : (D*Cin, Cout*W)   VMEM  1x1 weights as lane rows
                                      w1[d*Cin+c, o*W+w] = w1[d,o,c]
    beff_ref: (D, Cout*W)       VMEM  folded bias rows: b1[o] + sum_c w1[o,c]*bd[c]
    o_ref   : (1, H, D*Cout*W)  VMEM  lane-dense output slab
    """
    # Max lane shift is 2*d_max, so this width keeps every channel window valid.
    Lc = (Cin - 1) * Wp + W                    # == Cin*Wp - 2*d_max
    CoutW = Cout * W

    row_cache = {}                             # trace-time dedup across (d, ky)

    def rows_at(r0):
        if r0 not in row_cache:
            row_cache[r0] = xpk_ref[0, r0:r0 + H, :]        # (H, Cin*Wp) load
        return row_cache[r0]

    for di, d in enumerate(dilations):         # static unroll over branches
        off = d_max - d                        # static per-branch corner offset

        # ---- depthwise 3x3: all Cin channels processed together along lanes ----
        acc = None                             # (H, Lc)
        for ky in range(3):
            rows = rows_at(off + ky * d)       # sublane-shift load, hoisted out of kx
            for kx in range(3):
                c0 = off + kx * d              # static lane shift
                shifted = rows[:, c0:c0 + Lc]                          # (H, Lc)
                idx = di * 9 + ky * 3 + kx
                w_row = wtap_ref[idx:idx + 1, 0:Lc]                    # (1, Lc)
                term = shifted * w_row
                acc = term if acc is None else acc + term

        # ---- 1x1 pointwise: Cout packed along lanes -> (H, Cout*W) tile ----
        out = None
        for c in range(Cin):
            a_c = acc[:, c * Wp:c * Wp + W]                            # (H, W)
            a_t = jnp.concatenate([a_c] * Cout, axis=1)                # (H, Cout*W)
            w1r = w1_ref[di * Cin + c:di * Cin + c + 1, :]             # (1, Cout*W)
            t = a_t * w1r
            out = t if out is None else out + t
        out = out + beff_ref[di:di + 1, :]

        # 128-aligned, 128-wide slice of the lane-dense slab: unmasked store.
        o_ref[0, :, di * CoutW:(di + 1) * CoutW] = out


def dilation_rates_forward(x_nchw, params, dilations):
    """params: per dilation (wd (Cin,3,3), bd (Cin,), w1 (Cout,Cin), b1 (Cout,)).

    wd[c,ky,kx] == torch depthwise weight[c,0,ky,kx];
    w1[o,c]     == torch pointwise weight[o,c,0,0].
    """
    x = x_nchw.astype(jnp.float32)
    N, Cin, H, W = x.shape
    D = len(dilations)
    d_max = int(max(dilations))
    Hp, Wp = H + 2 * d_max, W + 2 * d_max

    # Single shared pad, then pack channels along lanes: (N, Hp, Cin*Wp).
    xp = jnp.pad(x, ((0, 0), (0, 0), (d_max, d_max), (d_max, d_max)))
    xpk = xp.transpose(0, 2, 1, 3).reshape(N, Hp, Cin * Wp)

    wd_all = jnp.stack([p[0] for p in params]).astype(jnp.float32)  # (D, Cin, 3, 3)
    bd_all = jnp.stack([p[1] for p in params]).astype(jnp.float32)  # (D, Cin)
    w1_all = jnp.stack([p[2] for p in params]).astype(jnp.float32)  # (D, Cout, Cin)
    b1_all = jnp.stack([p[3] for p in params]).astype(jnp.float32)  # (D, Cout)
    Cout = w1_all.shape[1]
    CoutW = Cout * W

    # Fold depthwise bias into the pointwise bias: beff = b1 + w1 @ bd (per branch).
    beff = b1_all + jnp.einsum("doc,dc->do", w1_all, bd_all)        # (D, Cout)

    # Pre-broadcast weights/biases into lane rows (tiny, done once on the host).
    wtap = jnp.broadcast_to(
        wd_all.transpose(0, 2, 3, 1)[..., None], (D, 3, 3, Cin, Wp)
    ).reshape(D * 9, Cin * Wp)                                      # (D*9, Cin*Wp)
    w1_lane = jnp.broadcast_to(
        w1_all.transpose(0, 2, 1)[..., None], (D, Cin, Cout, W)
    ).reshape(D * Cin, CoutW)                                       # (D*Cin, Cout*W)
    beff_lane = jnp.broadcast_to(beff[..., None], (D, Cout, W)).reshape(D, CoutW)

    kernel = functools.partial(
        _fused_dilation_kernel,
        dilations=tuple(int(d) for d in dilations),
        d_max=d_max, H=H, W=W, Cin=Cin, Cout=Cout, Wp=Wp)

    out_flat = pl.pallas_call(
        kernel,
        out_shape=jax.ShapeDtypeStruct((N, H, D * CoutW), jnp.float32),
        grid=(N,),
        in_specs=[
            # Full padded image for batch n, fetched once and reused by all branches.
            pl.BlockSpec((1, Hp, Cin * Wp), lambda n: (n, 0, 0)),
            # Small weight tables, constant across the grid (fetched once).
            pl.BlockSpec((D * 9, Cin * Wp), lambda n: (0, 0)),
            pl.BlockSpec((D * Cin, CoutW), lambda n: (0, 0)),
            pl.BlockSpec((D, CoutW), lambda n: (0, 0)),
        ],
        # Lane-dense output slab; each branch writes its 128-wide channel slice.
        out_specs=pl.BlockSpec((1, H, D * CoutW), lambda n: (n, 0, 0)),
        compiler_params=pltpu.CompilerParams(
            dimension_semantics=("parallel",)),
    )(xpk, wtap, w1_lane, beff_lane)

    # (N, H, D*Cout*W) -> (N, D*Cout, H, W)  (cheap wrapper-side layout plumbing).
    return out_flat.reshape(N, H, D * Cout, W).transpose(0, 2, 1, 3)


def init_params(key, in_channels, out_channels, dilations):
    params = []
    for _ in dilations:
        key, k1, k2, k3, k4 = jax.random.split(key, 5)
        wd = 0.1 * jax.random.normal(k1, (in_channels, 3, 3), jnp.float32)
        bd = 0.1 * jax.random.normal(k2, (in_channels,), jnp.float32)
        w1 = 0.1 * jax.random.normal(k3, (out_channels, in_channels), jnp.float32)
        b1 = 0.1 * jax.random.normal(k4, (out_channels,), jnp.float32)
        params.append((wd, bd, w1, b1))
    return params


def _reference_forward(x_nchw, params, dilations):
    """Pure-JAX reference (lax conv), NCHW end to end, for validation."""
    x = x_nchw.astype(jnp.float32)
    cin = x.shape[1]
    outs = []
    for (wd, bd, w1, b1), d in zip(params, dilations):
        dw = jax.lax.conv_general_dilated(
            x, wd[:, None, :, :], (1, 1), [(d, d), (d, d)],
            rhs_dilation=(d, d),
            dimension_numbers=("NCHW", "OIHW", "NCHW"),
            feature_group_count=cin) + bd.reshape(1, cin, 1, 1)
        pw = jnp.einsum("nchw,oc->nohw", dw, w1) + b1.reshape(1, -1, 1, 1)
        outs.append(pw)
    return jnp.concatenate(outs, axis=1)


if __name__ == "__main__":
    in_channels, out_channels = 4, 8
    dilations = (1, 2, 3)
    N, H, W = 2, 16, 16

    key = jax.random.PRNGKey(0)
    key, xkey = jax.random.split(key)
    x = jax.random.normal(xkey, (N, in_channels, H, W), jnp.float32)
    params = init_params(key, in_channels, out_channels, dilations)

    out = jax.block_until_ready(dilation_rates_forward(x, params, dilations))
    assert out.shape == (N, out_channels * len(dilations), H, W), out.shape

    ref = jax.block_until_ready(_reference_forward(x, params, dilations))
    max_err = float(jnp.max(jnp.abs(out - ref)))
    assert jnp.allclose(out, ref, atol=1e-4, rtol=1e-4), max_err

    print("KERNEL_OK")
</pallas_src>

<mosaic_0001>
module attributes {stable_mosaic.version = 11 : i64} {
  func.func @_fused_dilation_kernel(%arg0: i32, %arg1: memref<1x22x88xf32, #tpu.memory_space<vmem>>, %arg2: memref<27x88xf32, #tpu.memory_space<vmem>>, %arg3: memref<12x128xf32, #tpu.memory_space<vmem>>, %arg4: memref<3x128xf32, #tpu.memory_space<vmem>>, %arg5: memref<1x16x384xf32, #tpu.memory_space<vmem>>) attributes {dimension_semantics = [#tpu.dimension_semantics<parallel>], iteration_bounds = array<i64: 2>, scalar_prefetch = 0 : i64, scratch_operands = 0 : i64, tpu.core_type = #tpu.core_type<tc>, window_params = [{transform_indices = @transform_0, window_bounds = array<i64: 1, 22, 88>}, {pipeline_mode = #tpu.pipeline_mode<synchronous>, transform_indices = @transform_1, window_bounds = array<i64: 27, 88>}, {pipeline_mode = #tpu.pipeline_mode<synchronous>, transform_indices = @transform_2, window_bounds = array<i64: 12, 128>}, {pipeline_mode = #tpu.pipeline_mode<synchronous>, transform_indices = @transform_3, window_bounds = array<i64: 3, 128>}, {transform_indices = @transform_4, window_bounds = array<i64: 1, 16, 384>}]} {
    %c0 = arith.constant 0 : index
    %c2 = arith.constant 2 : index
    %c0_0 = arith.constant 0 : index
    %0 = vector.load %arg1[%c0, %c2, %c0_0] : memref<1x22x88xf32, #tpu.memory_space<vmem>>, vector<1x16x88xf32>
    %1 = vector.shape_cast %0 : vector<1x16x88xf32> to vector<16x88xf32>
    %2 = vector.extract_strided_slice %1 {offsets = [0, 2], sizes = [16, 82], strides = [1, 1]} : vector<16x88xf32> to vector<16x82xf32>
    %c0_1 = arith.constant 0 : index
    %c0_2 = arith.constant 0 : index
    %3 = vector.load %arg2[%c0_1, %c0_2] : memref<27x88xf32, #tpu.memory_space<vmem>>, vector<1x82xf32>
    %4 = vector.broadcast %3 : vector<1x82xf32> to vector<16x82xf32>
    %5 = arith.mulf %2, %4 : vector<16x82xf32>
    %6 = vector.extract_strided_slice %1 {offsets = [0, 3], sizes = [16, 82], strides = [1, 1]} : vector<16x88xf32> to vector<16x82xf32>
    %c1 = arith.constant 1 : index
    %c0_3 = arith.constant 0 : index
    %7 = vector.load %arg2[%c1, %c0_3] : memref<27x88xf32, #tpu.memory_space<vmem>>, vector<1x82xf32>
    %8 = vector.broadcast %7 : vector<1x82xf32> to vector<16x82xf32>
    %9 = arith.mulf %6, %8 : vector<16x82xf32>
    %10 = arith.addf %5, %9 : vector<16x82xf32>
    %11 = vector.extract_strided_slice %1 {offsets = [0, 4], sizes = [16, 82], strides = [1, 1]} : vector<16x88xf32> to vector<16x82xf32>
    %c2_4 = arith.constant 2 : index
    %c0_5 = arith.constant 0 : index
    %12 = vector.load %arg2[%c2_4, %c0_5] : memref<27x88xf32, #tpu.memory_space<vmem>>, vector<1x82xf32>
    %13 = vector.broadcast %12 : vector<1x82xf32> to vector<16x82xf32>
    %14 = arith.mulf %11, %13 : vector<16x82xf32>
    %15 = arith.addf %10, %14 : vector<16x82xf32>
    %c0_6 = arith.constant 0 : index
    %c3 = arith.constant 3 : index
    %c0_7 = arith.constant 0 : index
    %16 = vector.load %arg1[%c0_6, %c3, %c0_7] : memref<1x22x88xf32, #tpu.memory_space<vmem>>, vector<1x16x88xf32>
    %17 = vector.shape_cast %16 : vector<1x16x88xf32> to vector<16x88xf32>
    %18 = vector.extract_strided_slice %17 {offsets = [0, 2], sizes = [16, 82], strides = [1, 1]} : vector<16x88xf32> to vector<16x82xf32>
    %c3_8 = arith.constant 3 : index
    %c0_9 = arith.constant 0 : index
    %19 = vector.load %arg2[%c3_8, %c0_9] : memref<27x88xf32, #tpu.memory_space<vmem>>, vector<1x82xf32>
    %20 = vector.broadcast %19 : vector<1x82xf32> to vector<16x82xf32>
    %21 = arith.mulf %18, %20 : vector<16x82xf32>
    %22 = arith.addf %15, %21 : vector<16x82xf32>
    %23 = vector.extract_strided_slice %17 {offsets = [0, 3], sizes = [16, 82], strides = [1, 1]} : vector<16x88xf32> to vector<16x82xf32>
    %c4 = arith.constant 4 : index
    %c0_10 = arith.constant 0 : index
    %24 = vector.load %arg2[%c4, %c0_10] : memref<27x88xf32, #tpu.memory_space<vmem>>, vector<1x82xf32>
    %25 = vector.broadcast %24 : vector<1x82xf32> to vector<16x82xf32>
    %26 = arith.mulf %23, %25 : vector<16x82xf32>
    %27 = arith.addf %22, %26 : vector<16x82xf32>
    %28 = vector.extract_strided_slice %17 {offsets = [0, 4], sizes = [16, 82], strides = [1, 1]} : vector<16x88xf32> to vector<16x82xf32>
    %c5 = arith.constant 5 : index
    %c0_11 = arith.constant 0 : index
    %29 = vector.load %arg2[%c5, %c0_11] : memref<27x88xf32, #tpu.memory_space<vmem>>, vector<1x82xf32>
    %30 = vector.broadcast %29 : vector<1x82xf32> to vector<16x82xf32>
    %31 = arith.mulf %28, %30 : vector<16x82xf32>
    %32 = arith.addf %27, %31 : vector<16x82xf32>
    %c0_12 = arith.constant 0 : index
    %c4_13 = arith.constant 4 : index
    %c0_14 = arith.constant 0 : index
    %33 = vector.load %arg1[%c0_12, %c4_13, %c0_14] : memref<1x22x88xf32, #tpu.memory_space<vmem>>, vector<1x16x88xf32>
    %34 = vector.shape_cast %33 : vector<1x16x88xf32> to vector<16x88xf32>
    %35 = vector.extract_strided_slice %34 {offsets = [0, 2], sizes = [16, 82], strides = [1, 1]} : vector<16x88xf32> to vector<16x82xf32>
    %c6 = arith.constant 6 : index
    %c0_15 = arith.constant 0 : index
    %36 = vector.load %arg2[%c6, %c0_15] : memref<27x88xf32, #tpu.memory_space<vmem>>, vector<1x82xf32>
    %37 = vector.broadcast %36 : vector<1x82xf32> to vector<16x82xf32>
    %38 = arith.mulf %35, %37 : vector<16x82xf32>
    %39 = arith.addf %32, %38 : vector<16x82xf32>
    %40 = vector.extract_strided_slice %34 {offsets = [0, 3], sizes = [16, 82], strides = [1, 1]} : vector<16x88xf32> to vector<16x82xf32>
    %c7 = arith.constant 7 : index
    %c0_16 = arith.constant 0 : index
    %41 = vector.load %arg2[%c7, %c0_16] : memref<27x88xf32, #tpu.memory_space<vmem>>, vector<1x82xf32>
    %42 = vector.broadcast %41 : vector<1x82xf32> to vector<16x82xf32>
    %43 = arith.mulf %40, %42 : vector<16x82xf32>
    %44 = arith.addf %39, %43 : vector<16x82xf32>
    %45 = vector.extract_strided_slice %34 {offsets = [0, 4], sizes = [16, 82], strides = [1, 1]} : vector<16x88xf32> to vector<16x82xf32>
    %c8 = arith.constant 8 : index
    %c0_17 = arith.constant 0 : index
    %46 = vector.load %arg2[%c8, %c0_17] : memref<27x88xf32, #tpu.memory_space<vmem>>, vector<1x82xf32>
    %47 = vector.broadcast %46 : vector<1x82xf32> to vector<16x82xf32>
    %48 = arith.mulf %45, %47 : vector<16x82xf32>
    %49 = arith.addf %44, %48 : vector<16x82xf32>
    %50 = vector.extract_strided_slice %49 {offsets = [0, 0], sizes = [16, 16], strides = [1, 1]} : vector<16x82xf32> to vector<16x16xf32>
    %51 = tpu.concatenate %50, %50, %50, %50, %50, %50, %50, %50 in 1 : vector<16x16xf32>, vector<16x16xf32>, vector<16x16xf32>, vector<16x16xf32>, vector<16x16xf32>, vector<16x16xf32>, vector<16x16xf32>, vector<16x16xf32> -> vector<16x128xf32>
    %c0_18 = arith.constant 0 : index
    %c0_19 = arith.constant 0 : index
    %52 = vector.load %arg3[%c0_18, %c0_19] : memref<12x128xf32, #tpu.memory_space<vmem>>, vector<1x128xf32>
    %53 = vector.broadcast %52 : vector<1x128xf32> to vector<16x128xf32>
    %54 = arith.mulf %51, %53 : vector<16x128xf32>
    %55 = vector.extract_strided_slice %49 {offsets = [0, 22], sizes = [16, 16], strides = [1, 1]} : vector<16x82xf32> to vector<16x16xf32>
    %56 = tpu.concatenate %55, %55, %55, %55, %55, %55, %55, %55 in 1 : vector<16x16xf32>, vector<16x16xf32>, vector<16x16xf32>, vector<16x16xf32>, vector<16x16xf32>, vector<16x16xf32>, vector<16x16xf32>, vector<16x16xf32> -> vector<16x128xf32>
    %c1_20 = arith.constant 1 : index
    %c0_21 = arith.constant 0 : index
    %57 = vector.load %arg3[%c1_20, %c0_21] : memref<12x128xf32, #tpu.memory_space<vmem>>, vector<1x128xf32>
    %58 = vector.broadcast %57 : vector<1x128xf32> to vector<16x128xf32>
    %59 = arith.mulf %56, %58 : vector<16x128xf32>
    %60 = arith.addf %54, %59 : vector<16x128xf32>
    %61 = vector.extract_strided_slice %49 {offsets = [0, 44], sizes = [16, 16], strides = [1, 1]} : vector<16x82xf32> to vector<16x16xf32>
    %62 = tpu.concatenate %61, %61, %61, %61, %61, %61, %61, %61 in 1 : vector<16x16xf32>, vector<16x16xf32>, vector<16x16xf32>, vector<16x16xf32>, vector<16x16xf32>, vector<16x16xf32>, vector<16x16xf32>, vector<16x16xf32> -> vector<16x128xf32>
    %c2_22 = arith.constant 2 : index
    %c0_23 = arith.constant 0 : index
    %63 = vector.load %arg3[%c2_22, %c0_23] : memref<12x128xf32, #tpu.memory_space<vmem>>, vector<1x128xf32>
    %64 = vector.broadcast %63 : vector<1x128xf32> to vector<16x128xf32>
    %65 = arith.mulf %62, %64 : vector<16x128xf32>
    %66 = arith.addf %60, %65 : vector<16x128xf32>
    %67 = vector.extract_strided_slice %49 {offsets = [0, 66], sizes = [16, 16], strides = [1, 1]} : vector<16x82xf32> to vector<16x16xf32>
    %68 = tpu.concatenate %67, %67, %67, %67, %67, %67, %67, %67 in 1 : vector<16x16xf32>, vector<16x16xf32>, vector<16x16xf32>, vector<16x16xf32>, vector<16x16xf32>, vector<16x16xf32>, vector<16x16xf32>, vector<16x16xf32> -> vector<16x128xf32>
    %c3_24 = arith.constant 3 : index
    %c0_25 = arith.constant 0 : index
    %69 = vector.load %arg3[%c3_24, %c0_25] : memref<12x128xf32, #tpu.memory_space<vmem>>, vector<1x128xf32>
    %70 = vector.broadcast %69 : vector<1x128xf32> to vector<16x128xf32>
    %71 = arith.mulf %68, %70 : vector<16x128xf32>
    %72 = arith.addf %66, %71 : vector<16x128xf32>
    %c0_26 = arith.constant 0 : index
    %c0_27 = arith.constant 0 : index
    %73 = vector.load %arg4[%c0_26, %c0_27] : memref<3x128xf32, #tpu.memory_space<vmem>>, vector<1x128xf32>
    %74 = vector.broadcast %73 : vector<1x128xf32> to vector<16x128xf32>
    %75 = arith.addf %72, %74 : vector<16x128xf32>
    %c0_28 = arith.constant 0 : index
    %c0_29 = arith.constant 0 : index
    %c0_30 = arith.constant 0 : index
    %76 = vector.load %arg5[%c0_28, %c0_29, %c0_30] : memref<1x16x384xf32, #tpu.memory_space<vmem>>, vector<1x16x128xf32>
    %77 = vector.shape_cast %76 : vector<1x16x128xf32> to vector<16x128xf32>
    %78 = vector.shape_cast %75 : vector<16x128xf32> to vector<1x16x128xf32>
    tpu.vector_store %arg5[%c0_28, %c0_29, %c0_30], %78 {strides = array<i32>} : memref<1x16x384xf32, #tpu.memory_space<vmem>>, vector<1x16x128xf32>,
    %c0_31 = arith.constant 0 : index
    %c1_32 = arith.constant 1 : index
    %c0_33 = arith.constant 0 : index
    %79 = vector.load %arg1[%c0_31, %c1_32, %c0_33] : memref<1x22x88xf32, #tpu.memory_space<vmem>>, vector<1x16x88xf32>
    %80 = vector.shape_cast %79 : vector<1x16x88xf32> to vector<16x88xf32>
    %81 = vector.extract_strided_slice %80 {offsets = [0, 1], sizes = [16, 82], strides = [1, 1]} : vector<16x88xf32> to vector<16x82xf32>
    %c9 = arith.constant 9 : index
    %c0_34 = arith.constant 0 : index
    %82 = vector.load %arg2[%c9, %c0_34] : memref<27x88xf32, #tpu.memory_space<vmem>>, vector<1x82xf32>
    %83 = vector.broadcast %82 : vector<1x82xf32> to vector<16x82xf32>
    %84 = arith.mulf %81, %83 : vector<16x82xf32>
    %85 = vector.extract_strided_slice %80 {offsets = [0, 3], sizes = [16, 82], strides = [1, 1]} : vector<16x88xf32> to vector<16x82xf32>
    %c10 = arith.constant 10 : index
    %c0_35 = arith.constant 0 : index
    %86 = vector.load %arg2[%c10, %c0_35] : memref<27x88xf32, #tpu.memory_space<vmem>>, vector<1x82xf32>
    %87 = vector.broadcast %86 : vector<1x82xf32> to vector<16x82xf32>
    %88 = arith.mulf %85, %87 : vector<16x82xf32>
    %89 = arith.addf %84, %88 : vector<16x82xf32>
    %90 = vector.extract_strided_slice %80 {offsets = [0, 5], sizes = [16, 82], strides = [1, 1]} : vector<16x88xf32> to vector<16x82xf32>
    %c11 = arith.constant 11 : index
    %c0_36 = arith.constant 0 : index
    %91 = vector.load %arg2[%c11, %c0_36] : memref<27x88xf32, #tpu.memory_space<vmem>>, vector<1x82xf32>
    %92 = vector.broadcast %91 : vector<1x82xf32> to vector<16x82xf32>
    %93 = arith.mulf %90, %92 : vector<16x82xf32>
    %94 = arith.addf %89, %93 : vector<16x82xf32>
    %95 = vector.extract_strided_slice %17 {offsets = [0, 1], sizes = [16, 82], strides = [1, 1]} : vector<16x88xf32> to vector<16x82xf32>
    %c12 = arith.constant 12 : index
    %c0_37 = arith.constant 0 : index
    %96 = vector.load %arg2[%c12, %c0_37] : memref<27x88xf32, #tpu.memory_space<vmem>>, vector<1x82xf32>
    %97 = vector.broadcast %96 : vector<1x82xf32> to vector<16x82xf32>
    %98 = arith.mulf %95, %97 : vector<16x82xf32>
    %99 = arith.addf %94, %98 : vector<16x82xf32>
    %100 = vector.extract_strided_slice %17 {offsets = [0, 3], sizes = [16, 82], strides = [1, 1]} : vector<16x88xf32> to vector<16x82xf32>
    %c13 = arith.constant 13 : index
    %c0_38 = arith.constant 0 : index
    %101 = vector.load %arg2[%c13, %c0_38] : memref<27x88xf32, #tpu.memory_space<vmem>>, vector<1x82xf32>
    %102 = vector.broadcast %101 : vector<1x82xf32> to vector<16x82xf32>
    %103 = arith.mulf %100, %102 : vector<16x82xf32>
    %104 = arith.addf %99, %103 : vector<16x82xf32>
    %105 = vector.extract_strided_slice %17 {offsets = [0, 5], sizes = [16, 82], strides = [1, 1]} : vector<16x88xf32> to vector<16x82xf32>
    %c14 = arith.constant 14 : index
    %c0_39 = arith.constant 0 : index
    %106 = vector.load %arg2[%c14, %c0_39] : memref<27x88xf32, #tpu.memory_space<vmem>>, vector<1x82xf32>
    %107 = vector.broadcast %106 : vector<1x82xf32> to vector<16x82xf32>
    %108 = arith.mulf %105, %107 : vector<16x82xf32>
    %109 = arith.addf %104, %108 : vector<16x82xf32>
    %c0_40 = arith.constant 0 : index
    %c5_41 = arith.constant 5 : index
    %c0_42 = arith.constant 0 : index
    %110 = vector.load %arg1[%c0_40, %c5_41, %c0_42] : memref<1x22x88xf32, #tpu.memory_space<vmem>>, vector<1x16x88xf32>
    %111 = vector.shape_cast %110 : vector<1x16x88xf32> to vector<16x88xf32>
    %112 = vector.extract_strided_slice %111 {offsets = [0, 1], sizes = [16, 82], strides = [1, 1]} : vector<16x88xf32> to vector<16x82xf32>
    %c15 = arith.constant 15 : index
    %c0_43 = arith.constant 0 : index
    %113 = vector.load %arg2[%c15, %c0_43] : memref<27x88xf32, #tpu.memory_space<vmem>>, vector<1x82xf32>
    %114 = vector.broadcast %113 : vector<1x82xf32> to vector<16x82xf32>
    %115 = arith.mulf %112, %114 : vector<16x82xf32>
    %116 = arith.addf %109, %115 : vector<16x82xf32>
    %117 = vector.extract_strided_slice %111 {offsets = [0, 3], sizes = [16, 82], strides = [1, 1]} : vector<16x88xf32> to vector<16x82xf32>
    %c16 = arith.constant 16 : index
    %c0_44 = arith.constant 0 : index
    %118 = vector.load %arg2[%c16, %c0_44] : memref<27x88xf32, #tpu.memory_space<vmem>>, vector<1x82xf32>
    %119 = vector.broadcast %118 : vector<1x82xf32> to vector<16x82xf32>
    %120 = arith.mulf %117, %119 : vector<16x82xf32>
    %121 = arith.addf %116, %120 : vector<16x82xf32>
    %122 = vector.extract_strided_slice %111 {offsets = [0, 5], sizes = [16, 82], strides = [1, 1]} : vector<16x88xf32> to vector<16x82xf32>
    %c17 = arith.constant 17 : index
    %c0_45 = arith.constant 0 : index
    %123 = vector.load %arg2[%c17, %c0_45] : memref<27x88xf32, #tpu.memory_space<vmem>>, vector<1x82xf32>
    %124 = vector.broadcast %123 : vector<1x82xf32> to vector<16x82xf32>
    %125 = arith.mulf %122, %124 : vector<16x82xf32>
    %126 = arith.addf %121, %125 : vector<16x82xf32>
    %127 = vector.extract_strided_slice %126 {offsets = [0, 0], sizes = [16, 16], strides = [1, 1]} : vector<16x82xf32> to vector<16x16xf32>
    %128 = tpu.concatenate %127, %127, %127, %127, %127, %127, %127, %127 in 1 : vector<16x16xf32>, vector<16x16xf32>, vector<16x16xf32>, vector<16x16xf32>, vector<16x16xf32>, vector<16x16xf32>, vector<16x16xf32>, vector<16x16xf32> -> vector<16x128xf32>
    %c4_46 = arith.constant 4 : index
    %c0_47 = arith.constant 0 : index
    %129 = vector.load %arg3[%c4_46, %c0_47] : memref<12x128xf32, #tpu.memory_space<vmem>>, vector<1x128xf32>
    %130 = vector.broadcast %129 : vector<1x128xf32> to vector<16x128xf32>
    %131 = arith.mulf %128, %130 : vector<16x128xf32>
    %132 = vector.extract_strided_slice %126 {offsets = [0, 22], sizes = [16, 16], strides = [1, 1]} : vector<16x82xf32> to vector<16x16xf32>
    %133 = tpu.concatenate %132, %132, %132, %132, %132, %132, %132, %132 in 1 : vector<16x16xf32>, vector<16x16xf32>, vector<16x16xf32>, vector<16x16xf32>, vector<16x16xf32>, vector<16x16xf32>, vector<16x16xf32>, vector<16x16xf32> -> vector<16x128xf32>
    %c5_48 = arith.constant 5 : index
    %c0_49 = arith.constant 0 : index
    %134 = vector.load %arg3[%c5_48, %c0_49] : memref<12x128xf32, #tpu.memory_space<vmem>>, vector<1x128xf32>
    %135 = vector.broadcast %134 : vector<1x128xf32> to vector<16x128xf32>
    %136 = arith.mulf %133, %135 : vector<16x128xf32>
    %137 = arith.addf %131, %136 : vector<16x128xf32>
    %138 = vector.extract_strided_slice %126 {offsets = [0, 44], sizes = [16, 16], strides = [1, 1]} : vector<16x82xf32> to vector<16x16xf32>
    %139 = tpu.concatenate %138, %138, %138, %138, %138, %138, %138, %138 in 1 : vector<16x16xf32>, vector<16x16xf32>, vector<16x16xf32>, vector<16x16xf32>, vector<16x16xf32>, vector<16x16xf32>, vector<16x16xf32>, vector<16x16xf32> -> vector<16x128xf32>
    %c6_50 = arith.constant 6 : index
    %c0_51 = arith.constant 0 : index
    %140 = vector.load %arg3[%c6_50, %c0_51] : memref<12x128xf32, #tpu.memory_space<vmem>>, vector<1x128xf32>
    %141 = vector.broadcast %140 : vector<1x128xf32> to vector<16x128xf32>
    %142 = arith.mulf %139, %141 : vector<16x128xf32>
    %143 = arith.addf %137, %142 : vector<16x128xf32>
    %144 = vector.extract_strided_slice %126 {offsets = [0, 66], sizes = [16, 16], strides = [1, 1]} : vector<16x82xf32> to vector<16x16xf32>
    %145 = tpu.concatenate %144, %144, %144, %144, %144, %144, %144, %144 in 1 : vector<16x16xf32>, vector<16x16xf32>, vector<16x16xf32>, vector<16x16xf32>, vector<16x16xf32>, vector<16x16xf32>, vector<16x16xf32>, vector<16x16xf32> -> vector<16x128xf32>
    %c7_52 = arith.constant 7 : index
    %c0_53 = arith.constant 0 : index
    %146 = vector.load %arg3[%c7_52, %c0_53] : memref<12x128xf32, #tpu.memory_space<vmem>>, vector<1x128xf32>
    %147 = vector.broadcast %146 : vector<1x128xf32> to vector<16x128xf32>
    %148 = arith.mulf %145, %147 : vector<16x128xf32>
    %149 = arith.addf %143, %148 : vector<16x128xf32>
    %c1_54 = arith.constant 1 : index
    %c0_55 = arith.constant 0 : index
    %150 = vector.load %arg4[%c1_54, %c0_55] : memref<3x128xf32, #tpu.memory_space<vmem>>, vector<1x128xf32>
    %151 = vector.broadcast %150 : vector<1x128xf32> to vector<16x128xf32>
    %152 = arith.addf %149, %151 : vector<16x128xf32>
    %c0_56 = arith.constant 0 : index
    %c0_57 = arith.constant 0 : index
    %c128 = arith.constant 128 : index
    %153 = vector.load %arg5[%c0_56, %c0_57, %c128] : memref<1x16x384xf32, #tpu.memory_space<vmem>>, vector<1x16x128xf32>
    %154 = vector.shape_cast %153 : vector<1x16x128xf32> to vector<16x128xf32>
    %155 = vector.shape_cast %152 : vector<16x128xf32> to vector<1x16x128xf32>
    tpu.vector_store %arg5[%c0_56, %c0_57, %c128], %155 {strides = array<i32>} : memref<1x16x384xf32, #tpu.memory_space<vmem>>, vector<1x16x128xf32>,
    %c0_58 = arith.constant 0 : index
    %c0_59 = arith.constant 0 : index
    %c0_60 = arith.constant 0 : index
    %156 = vector.load %arg1[%c0_58, %c0_59, %c0_60] : memref<1x22x88xf32, #tpu.memory_space<vmem>>, vector<1x16x88xf32>
    %157 = vector.shape_cast %156 : vector<1x16x88xf32> to vector<16x88xf32>
    %158 = vector.extract_strided_slice %157 {offsets = [0, 0], sizes = [16, 82], strides = [1, 1]} : vector<16x88xf32> to vector<16x82xf32>
    %c18 = arith.constant 18 : index
    %c0_61 = arith.constant 0 : index
    %159 = vector.load %arg2[%c18, %c0_61] : memref<27x88xf32, #tpu.memory_space<vmem>>, vector<1x82xf32>
    %160 = vector.broadcast %159 : vector<1x82xf32> to vector<16x82xf32>
    %161 = arith.mulf %158, %160 : vector<16x82xf32>
    %162 = vector.extract_strided_slice %157 {offsets = [0, 3], sizes = [16, 82], strides = [1, 1]} : vector<16x88xf32> to vector<16x82xf32>
    %c19 = arith.constant 19 : index
    %c0_62 = arith.constant 0 : index
    %163 = vector.load %arg2[%c19, %c0_62] : memref<27x88xf32, #tpu.memory_space<vmem>>, vector<1x82xf32>
    %164 = vector.broadcast %163 : vector<1x82xf32> to vector<16x82xf32>
    %165 = arith.mulf %162, %164 : vector<16x82xf32>
    %166 = arith.addf %161, %165 : vector<16x82xf32>
    %167 = vector.extract_strided_slice %157 {offsets = [0, 6], sizes = [16, 82], strides = [1, 1]} : vector<16x88xf32> to vector<16x82xf32>
    %c20 = arith.constant 20 : index
    %c0_63 = arith.constant 0 : index
    %168 = vector.load %arg2[%c20, %c0_63] : memref<27x88xf32, #tpu.memory_space<vmem>>, vector<1x82xf32>
    %169 = vector.broadcast %168 : vector<1x82xf32> to vector<16x82xf32>
    %170 = arith.mulf %167, %169 : vector<16x82xf32>
    %171 = arith.addf %166, %170 : vector<16x82xf32>
    %172 = vector.extract_strided_slice %17 {offsets = [0, 0], sizes = [16, 82], strides = [1, 1]} : vector<16x88xf32> to vector<16x82xf32>
    %c21 = arith.constant 21 : index
    %c0_64 = arith.constant 0 : index
    %173 = vector.load %arg2[%c21, %c0_64] : memref<27x88xf32, #tpu.memory_space<vmem>>, vector<1x82xf32>
    %174 = vector.broadcast %173 : vector<1x82xf32> to vector<16x82xf32>
    %175 = arith.mulf %172, %174 : vector<16x82xf32>
    %176 = arith.addf %171, %175 : vector<16x82xf32>
    %177 = vector.extract_strided_slice %17 {offsets = [0, 3], sizes = [16, 82], strides = [1, 1]} : vector<16x88xf32> to vector<16x82xf32>
    %c22 = arith.constant 22 : index
    %c0_65 = arith.constant 0 : index
    %178 = vector.load %arg2[%c22, %c0_65] : memref<27x88xf32, #tpu.memory_space<vmem>>, vector<1x82xf32>
    %179 = vector.broadcast %178 : vector<1x82xf32> to vector<16x82xf32>
    %180 = arith.mulf %177, %179 : vector<16x82xf32>
    %181 = arith.addf %176, %180 : vector<16x82xf32>
    %182 = vector.extract_strided_slice %17 {offsets = [0, 6], sizes = [16, 82], strides = [1, 1]} : vector<16x88xf32> to vector<16x82xf32>
    %c23 = arith.constant 23 : index
    %c0_66 = arith.constant 0 : index
    %183 = vector.load %arg2[%c23, %c0_66] : memref<27x88xf32, #tpu.memory_space<vmem>>, vector<1x82xf32>
    %184 = vector.broadcast %183 : vector<1x82xf32> to vector<16x82xf32>
    %185 = arith.mulf %182, %184 : vector<16x82xf32>
    %186 = arith.addf %181, %185 : vector<16x82xf32>
    %c0_67 = arith.constant 0 : index
    %c6_68 = arith.constant 6 : index
    %c0_69 = arith.constant 0 : index
    %187 = vector.load %arg1[%c0_67, %c6_68, %c0_69] : memref<1x22x88xf32, #tpu.memory_space<vmem>>, vector<1x16x88xf32>
    %188 = vector.shape_cast %187 : vector<1x16x88xf32> to vector<16x88xf32>
    %189 = vector.extract_strided_slice %188 {offsets = [0, 0], sizes = [16, 82], strides = [1, 1]} : vector<16x88xf32> to vector<16x82xf32>
    %c24 = arith.constant 24 : index
    %c0_70 = arith.constant 0 : index
    %190 = vector.load %arg2[%c24, %c0_70] : memref<27x88xf32, #tpu.memory_space<vmem>>, vector<1x82xf32>
    %191 = vector.broadcast %190 : vector<1x82xf32> to vector<16x82xf32>
    %192 = arith.mulf %189, %191 : vector<16x82xf32>
    %193 = arith.addf %186, %192 : vector<16x82xf32>
    %194 = vector.extract_strided_slice %188 {offsets = [0, 3], sizes = [16, 82], strides = [1, 1]} : vector<16x88xf32> to vector<16x82xf32>
    %c25 = arith.constant 25 : index
    %c0_71 = arith.constant 0 : index
    %195 = vector.load %arg2[%c25, %c0_71] : memref<27x88xf32, #tpu.memory_space<vmem>>, vector<1x82xf32>
    %196 = vector.broadcast %195 : vector<1x82xf32> to vector<16x82xf32>
    %197 = arith.mulf %194, %196 : vector<16x82xf32>
    %198 = arith.addf %193, %197 : vector<16x82xf32>
    %199 = vector.extract_strided_slice %188 {offsets = [0, 6], sizes = [16, 82], strides = [1, 1]} : vector<16x88xf32> to vector<16x82xf32>
    %c26 = arith.constant 26 : index
    %c0_72 = arith.constant 0 : index
    %200 = vector.load %arg2[%c26, %c0_72] : memref<27x88xf32, #tpu.memory_space<vmem>>, vector<1x82xf32>
    %201 = vector.broadcast %200 : vector<1x82xf32> to vector<16x82xf32>
    %202 = arith.mulf %199, %201 : vector<16x82xf32>
    %203 = arith.addf %198, %202 : vector<16x82xf32>
    %204 = vector.extract_strided_slice %203 {offsets = [0, 0], sizes = [16, 16], strides = [1, 1]} : vector<16x82xf32> to vector<16x16xf32>
    %205 = tpu.concatenate %204, %204, %204, %204, %204, %204, %204, %204 in 1 : vector<16x16xf32>, vector<16x16xf32>, vector<16x16xf32>, vector<16x16xf32>, vector<16x16xf32>, vector<16x16xf32>, vector<16x16xf32>, vector<16x16xf32> -> vector<16x128xf32>
    %c8_73 = arith.constant 8 : index
    %c0_74 = arith.constant 0 : index
    %206 = vector.load %arg3[%c8_73, %c0_74] : memref<12x128xf32, #tpu.memory_space<vmem>>, vector<1x128xf32>
    %207 = vector.broadcast %206 : vector<1x128xf32> to vector<16x128xf32>
    %208 = arith.mulf %205, %207 : vector<16x128xf32>
    %209 = vector.extract_strided_slice %203 {offsets = [0, 22], sizes = [16, 16], strides = [1, 1]} : vector<16x82xf32> to vector<16x16xf32>
    %210 = tpu.concatenate %209, %209, %209, %209, %209, %209, %209, %209 in 1 : vector<16x16xf32>, vector<16x16xf32>, vector<16x16xf32>, vector<16x16xf32>, vector<16x16xf32>, vector<16x16xf32>, vector<16x16xf32>, vector<16x16xf32> -> vector<16x128xf32>
    %c9_75 = arith.constant 9 : index
    %c0_76 = arith.constant 0 : index
    %211 = vector.load %arg3[%c9_75, %c0_76] : memref<12x128xf32, #tpu.memory_space<vmem>>, vector<1x128xf32>
    %212 = vector.broadcast %211 : vector<1x128xf32> to vector<16x128xf32>
    %213 = arith.mulf %210, %212 : vector<16x128xf32>
    %214 = arith.addf %208, %213 : vector<16x128xf32>
    %215 = vector.extract_strided_slice %203 {offsets = [0, 44], sizes = [16, 16], strides = [1, 1]} : vector<16x82xf32> to vector<16x16xf32>
    %216 = tpu.concatenate %215, %215, %215, %215, %215, %215, %215, %215 in 1 : vector<16x16xf32>, vector<16x16xf32>, vector<16x16xf32>, vector<16x16xf32>, vector<16x16xf32>, vector<16x16xf32>, vector<16x16xf32>, vector<16x16xf32> -> vector<16x128xf32>
    %c10_77 = arith.constant 10 : index
    %c0_78 = arith.constant 0 : index
    %217 = vector.load %arg3[%c10_77, %c0_78] : memref<12x128xf32, #tpu.memory_space<vmem>>, vector<1x128xf32>
    %218 = vector.broadcast %217 : vector<1x128xf32> to vector<16x128xf32>
    %219 = arith.mulf %216, %218 : vector<16x128xf32>
    %220 = arith.addf %214, %219 : vector<16x128xf32>
    %221 = vector.extract_strided_slice %203 {offsets = [0, 66], sizes = [16, 16], strides = [1, 1]} : vector<16x82xf32> to vector<16x16xf32>
    %222 = tpu.concatenate %221, %221, %221, %221, %221, %221, %221, %221 in 1 : vector<16x16xf32>, vector<16x16xf32>, vector<16x16xf32>, vector<16x16xf32>, vector<16x16xf32>, vector<16x16xf32>, vector<16x16xf32>, vector<16x16xf32> -> vector<16x128xf32>
    %c11_79 = arith.constant 11 : index
    %c0_80 = arith.constant 0 : index
    %223 = vector.load %arg3[%c11_79, %c0_80] : memref<12x128xf32, #tpu.memory_space<vmem>>, vector<1x128xf32>
    %224 = vector.broadcast %223 : vector<1x128xf32> to vector<16x128xf32>
    %225 = arith.mulf %222, %224 : vector<16x128xf32>
    %226 = arith.addf %220, %225 : vector<16x128xf32>
    %c2_81 = arith.constant 2 : index
    %c0_82 = arith.constant 0 : index
    %227 = vector.load %arg4[%c2_81, %c0_82] : memref<3x128xf32, #tpu.memory_space<vmem>>, vector<1x128xf32>
    %228 = vector.broadcast %227 : vector<1x128xf32> to vector<16x128xf32>
    %229 = arith.addf %226, %228 : vector<16x128xf32>
    %c0_83 = arith.constant 0 : index
    %c0_84 = arith.constant 0 : index
    %c256 = arith.constant 256 : index
    %230 = vector.load %arg5[%c0_83, %c0_84, %c256] : memref<1x16x384xf32, #tpu.memory_space<vmem>>, vector<1x16x128xf32>
    %231 = vector.shape_cast %230 : vector<1x16x128xf32> to vector<16x128xf32>
    %232 = vector.shape_cast %229 : vector<16x128xf32> to vector<1x16x128xf32>
    tpu.vector_store %arg5[%c0_83, %c0_84, %c256], %232 {strides = array<i32>} : memref<1x16x384xf32, #tpu.memory_space<vmem>>, vector<1x16x128xf32>,
    return
  }
  func.func @transform_0(%arg0: i32) -> (i32, i32, i32) {
    %c0_i32 = arith.constant 0 : i32
    %c0_i32_0 = arith.constant 0 : i32
    %c0_i32_1 = arith.constant 0 : i32
    return %arg0, %c0_i32, %c0_i32_0 : i32, i32, i32
  }
  func.func @transform_1(%arg0: i32) -> (i32, i32) {
    %c0_i32 = arith.constant 0 : i32
    %c0_i32_0 = arith.constant 0 : i32
    %c0_i32_1 = arith.constant 0 : i32
    return %c0_i32, %c0_i32_0 : i32, i32
  }
  func.func @transform_2(%arg0: i32) -> (i32, i32) {
    %c0_i32 = arith.constant 0 : i32
    %c0_i32_0 = arith.constant 0 : i32
    %c0_i32_1 = arith.constant 0 : i32
    return %c0_i32, %c0_i32_0 : i32, i32
  }
  func.func @transform_3(%arg0: i32) -> (i32, i32) {
    %c0_i32 = arith.constant 0 : i32
    %c0_i32_0 = arith.constant 0 : i32
    %c0_i32_1 = arith.constant 0 : i32
    return %c0_i32, %c0_i32_0 : i32, i32
  }
  func.func @transform_4(%arg0: i32) -> (i32, i32, i32) {
    %c0_i32 = arith.constant 0 : i32
    %c0_i32_0 = arith.constant 0 : i32
    %c0_i32_1 = arith.constant 0 : i32
    return %arg0, %c0_i32, %c0_i32_0 : i32, i32, i32
  }
}

</mosaic_0001>

<bundles_post_ra>
// kernel: tpu_custom_call.1
= control target key start
LH: loop header
LB: loop body
LE: loop exit
PB: predicated region body
PF: predicated region fallthrough
CT: control target
= control target key end

     0   :  { %9 = vsyncpa [#allocation3], 0  ;;  %s3109_s0 = inlined_call_operand.vmem [shape: f32[2,22,88], index: 0, kind: input, shape index: {}]   ;;  %s3110_s1 = inlined_call_operand.vmem [shape: f32[27,88], index: 1, kind: input, shape index: {}]   ;;  %s3111_s2 = inlined_call_operand.vmem [shape: f32[12,128], index: 2, kind: input, shape index: {}]   ;;  %s3112_s3 = inlined_call_operand.vmem [shape: f32[3,128], index: 3, kind: input, shape index: {}]   ;;  %s3113_s4 = inlined_call_operand.hbm [shape: f32[2,16,384], index: 4, kind: output, shape index: {}]  }
   0x1   :  { %11 = vsyncpa [#allocation3 + $0x1], 0  ;;  %s2009_s15 = smov 0   ;;  %s2011_s16 = smov 0  }
   0x2   :  { %s2013_s17 = smov 0   ;;  %s2015_s18 = smov 0  }
   0x3 LB: > { %s2030_s19 = sadd.s32 4294967295, %s1890_s18   ;;  %s1643_s20 = sadd.s32 4294967294, %s1890_s18   ;;  %s1890_s18 = sphi %s2015_s18, %s3127_s18   ;;  %s1886_s17 = sphi %s2013_s17, %s3126_s17   ;;  %s1882_s16 = sphi %s2011_s16, %s3125_s16   ;;  %s1878_s15 = sphi %s2009_s15, %s3124_s15  }
   0x4   : > { %s2034_s21 = sadd.s32 1, %s1890_s18   ;;  %s113_s22 = sadd.s32 1, %s1886_s17 }
   0x5   : > { %s110_s23 = ssub.s32 %s1890_s18, %s2034_s21  ;;  %p123_p0 = scmp.ne.s32.totalorder %s1886_s17, %s1882_s16 }
   0x6   : > { %p111_p1 = scmp.eq.s32.totalorder %s110_s23, 0  ;;  %p124_p2 = scmp.eq.s32.totalorder %s2030_s19, 1 }
   0x7   : > { %p129_p3 = scmp.ne.s32.totalorder %s1882_s16, %s1878_s15  ;;  %p130_p4 = scmp.eq.s32.totalorder %s1643_s20, 1 }
   0x8   : > { %s2045_s24 = scalar_select %p111_p1, %s1886_s17, %s113_s22  }
   0x9   : > { %p2047_p5 = por %p124_p2, %p123_p0  ;;  %p2051_p6 = por %p130_p4, %p129_p3 }
   0xa   : > { %p1646_p7 = scmp.ge.s32.totalorder %s1890_s18, 1  ;;  %p165_p8 = scmp.lt.s32.totalorder %s1890_s18, 3 }
   0xc   : > { %p166_p9 = pnand %p1646_p7, %p165_p8 }
   0xd   : > { %v1648_v0 = vld [vmem:[%s3110_s1] ss:$0 sm:$0xff] (!%p166_p9)  ;;  %s1892_s29 = smov (!%p166_p9), 2   ;;  %v1651_v1 = vld [vmem:[%s3110_s1 + $0x3] ss:$0 sm:$0xff] (!%p166_p9)  ;;  %s1893_s10 = smov (!%p166_p9), 3  }
   0xe   : > { %169 = sbr.rel (%p166_p9) target bundleno = 991 (0x3df), region = 36  ;;  %204 = vrot.lane.b32.xlu0 (!%p166_p9), %v1648_v0, %s1892_s29  ;;  %v1649_v2 = vld [vmem:[%s3110_s1 + $0x1] ss:$0 sm:$0xff] (!%p166_p9)  ;;  %259 = vrot.lane.b32.xlu1 (!%p166_p9), %v1651_v1, %s1892_s29  ;;  %v1653_v3 = vld [vmem:[%s3110_s1 + $0x5] ss:$0 sm:$0xff] (!%p166_p9)  ;;  %s1894_s13 = smov (!%p166_p9), 4  }
   0xf   : > { %v1650_v4 = vld [vmem:[%s3110_s1 + $0x2] ss:$0 sm:$0xff] (!%p166_p9)  ;;  %v1655_v5 = vld [vmem:[%s3110_s1 + $0x7] ss:$0 sm:$0xff] (!%p166_p9)  ;;  %v1652_v6 = vld [vmem:[%s3110_s1 + $0x4] ss:$0 sm:$0xff] (!%p166_p9) }
  0x10   : > { %v1662_v7 = vld [vmem:[%s3110_s1 + $0x9] ss:$0 sm:$0xff] (!%p166_p9)  ;;  %v1654_v8 = vld [vmem:[%s3110_s1 + $0x6] ss:$0 sm:$0xff] (!%p166_p9)  ;;  %s1895_s6 = smov (!%p166_p9), 1   ;;  %s1896_s12 = smov (!%p166_p9), 5  }
  0x11   : > { %v1664_v9 = vld [vmem:[%s3110_s1 + $0xb] ss:$0 sm:$0xff] (!%p166_p9)  ;;  %v1656_v10 = vld [vmem:[%s3110_s1 + $0x8] ss:$0 sm:$0xff] (!%p166_p9)  ;;  %v1666_v11 = vld [vmem:[%s3110_s1 + $0xd] ss:$0 sm:$0xff] (!%p166_p9) }
  0x12   : > { %215 = vrot.lane.b32.xlu0 (!%p166_p9), %v1649_v2, %s1893_s10  ;;  %293 = vrot.lane.b32.xlu1 (!%p166_p9), %v1653_v3, %s1894_s13  ;;  %v1663_v12 = vld [vmem:[%s3110_s1 + $0xa] ss:$0 sm:$0xff] (!%p166_p9)  ;;  %v1668_v13 = vld [vmem:[%s3110_s1 + $0xf] ss:$0 sm:$0xff] (!%p166_p9)  ;;  %p191_p10 = scmp.lt.s32.totalorder (!%p166_p9), %s2030_s19, 1  ;;  %s1898_s30 = smov (!%p166_p9), 126  }
  0x13   : > { %v1665_v14 = vld [vmem:[%s3110_s1 + $0xc] ss:$0 sm:$0xff] (!%p166_p9)  ;;  %v1670_v15 = vld [vmem:[%s3110_s1 + $0x11] ss:$0 sm:$0xff] (!%p166_p9)  ;;  %v1667_v16 = vld [vmem:[%s3110_s1 + $0xe] ss:$0 sm:$0xff] (!%p166_p9) }
  0x14   : > { %v1669_v17 = vld [vmem:[%s3110_s1 + $0x10] ss:$0 sm:$0xff] (!%p166_p9)  ;;  %s1899_s5 = smov (!%p166_p9), 124   ;;  %s1900_s7 = smov (!%p166_p9), 14   ;;  %vm415_vm0 = vcmask (!%p166_p9), 130048   ;;  %vm418_vm1 = vcmask (!%p166_p9), 261120  }
  0x15   : > { %s192_s22 = scalar_select %p191_p10, %s2030_s19, 1  ;;  %vm421_vm2 = vcmask 392192   ;;  %vm424_vm3 = vcmask 523264   ;;  %vm427_vm4 = vcmask 654336   ;;  %vm430_vm5 = vcmask 785408  }
  0x16   : > { %236 = vrot.lane.b32.xlu0 %v1650_v4, %s1894_s13  ;;  %329 = vrot.lane.b32.xlu1 %v1655_v5, %s1893_s10  ;;  %s3116_s8 = smov 30   ;;  %s3114_s9 = smov 46   ;;  %vm433_vm6 = vcmask 916480  }
  0x17   : > { %s1694_s23 = smul.u32 24, %s192_s22  ;;  %s1903_s11 = smov 62  }
  0x18   : > { %s1904_s14 = smov 78   ;;  %s1905_s20 = smov 94  }
  0x19   : > { %s1906_s22 = smov 110   ;;  %s1908_s27 = smov 120  }
  0x1a   : > { %272 = vrot.lane.b32.xlu0 %v1652_v6, %s1893_s10  ;;  %673 = vrot.lane.b32.xlu1 %v1662_v7, %s1895_s6  ;;  %s1909_s28 = smov 8  }
  0x1e   : > { %316 = vrot.lane.b32.xlu0 %v1654_v8, %s1892_s29  ;;  %705 = vrot.lane.b32.xlu1 %v1664_v9, %s1896_s12 }
  0x22   : > { %350 = vrot.lane.b32.xlu0 %v1656_v10, %s1894_s13  ;;  %739 = vrot.lane.b32.xlu1 %v1666_v11, %s1893_s10 }
  0x26   : > { %684 = vrot.lane.b32.xlu0 %v1663_v12, %s1893_s10  ;;  %783 = vrot.lane.b32.xlu1 %v1668_v13, %s1895_s6 }
  0x2a   : > { %726 = vrot.lane.b32.xlu0 %v1665_v14, %s1895_s6  ;;  %817 = vrot.lane.b32.xlu1 %v1670_v15, %s1896_s12  ;;  %s2130_s6 = scalar_lea.vmem %s3109_s0, %s1694_s23  ;;  %s1907_s23 = smov 104  }
  0x2b   : > { %v2133_v19 = vld [vmem:[%s2130_s6 + $0x2] sm:$0xff]  ;;  %v2140_v23 = vld [vmem:[%s2130_s6 + $0xa] sm:$0xff] }
  0x2c   : > { %v2145_v27 = vld [vmem:[%s2130_s6 + $0xb] sm:$0xff]  ;;  %v2151_v30 = vld [vmem:[%s2130_s6 + $0x3] sm:$0xff] }
  0x2d   : > { %v2159_v36 = vld [vmem:[%s2130_s6 + $0x4] sm:$0xff]  ;;  %v2168_v40 = vld [vmem:[%s2130_s6 + $0xc] sm:$0xff] }
  0x2e   : > { %760 = vrot.lane.b32.xlu0 %v1667_v16, %s1896_s12  ;;  %s1897_s12 = smov 127   ;;  %v2177_v46 = vld [vmem:[%s2130_s6 + $0x9] sm:$0xff]  ;;  %v2184_v50 = vld [vmem:[%s2130_s6 + $0x1] sm:$0xff] }
  0x2f   : > { %v2203_v61 = vld [vmem:[%s2130_s6 + $0xd] sm:$0xff]  ;;  %v2210_v1 = vld [vmem:[%s2130_s6 + $0x5] sm:$0xff] }
  0x32   : > { %796 = vrot.lane.b32.xlu0 %v1669_v17, %s1893_s10 }
  0x80   : > { %v2125_v18 = vpop.permute.xlu0 %204  ;;  %v2135_v21 = vpop.permute.xlu1 %259 }
  0x81   : > { %v208_v7 = vmul.f32 %v2125_v18, %v2140_v23  ;;  %v207_v10 = vmul.f32 %v2125_v18, %v2133_v19  ;;  %v262_v16 = vmul.f32 %v2135_v21, %v2151_v30  ;;  %v263_v17 = vmul.f32 %v2135_v21, %v2145_v27 }
  0x84   : > { %v216_v20 = vpop.permute.xlu0 %215  ;;  %v294_v28 = vpop.permute.xlu1 %293 }
  0x85   : > { %v218_v22 = vmul.f32 %v216_v20, %v2133_v19  ;;  %v219_v25 = vmul.f32 %v216_v20, %v2140_v23  ;;  %v296_v34 = vmul.f32 %v294_v28, %v2151_v30  ;;  %v297_v38 = vmul.f32 %v294_v28, %v2145_v27 }
  0x87   : > { %222 = vrot.lane.b32.xlu1 %v218_v22, %s1897_s12 }
  0x88   : > { %v237_v24 = vpop.permute.xlu0 %236  ;;  %v330_v35 = vpop.permute.xlu1 %329 }
  0x89   : > { %v240_v26 = vmul.f32 %v237_v24, %v2140_v23  ;;  %v239_v29 = vmul.f32 %v237_v24, %v2133_v19  ;;  %v332_v39 = vmul.f32 %v330_v35, %v2159_v36  ;;  %v333_v43 = vmul.f32 %v330_v35, %v2168_v40 }
  0x8b   : > { %245 = vrot.lane.b32.xlu0 %v240_v26, %s1898_s30  ;;  %224 = vrot.lane.b32.xlu1 %v219_v25, %s1897_s12 }
  0x8c   : > { %v273_v31 = vpop.permute.xlu0 %272  ;;  %v2170_v42 = vpop.permute.xlu1 %673 }
  0x8d   : > { %v276_v32 = vmul.f32 %v273_v31, %v2145_v27  ;;  %v275_v33 = vmul.f32 %v273_v31, %v2151_v30 }
  0x8f   : > { %281 = vrot.lane.b32.xlu0 %v276_v32, %s1897_s12  ;;  %243 = vrot.lane.b32.xlu1 %v239_v29, %s1898_s30 }
  0x90   : > { %v2161_v37 = vpop.permute.xlu0 %316  ;;  %v706_v47 = vpop.permute.xlu1 %705 }
  0x91   : > { %v708_v53 = vmul.f32 %v706_v47, %v2184_v50  ;;  %v709_v56 = vmul.f32 %v706_v47, %v2177_v46  ;;  %v319_v18 = vmul.f32 %v2161_v37, %v2159_v36  ;;  %v320_v32 = vmul.f32 %v2161_v37, %v2168_v40 }
  0x93   : > { %300 = vrot.lane.b32.xlu0 %v296_v34, %s1898_s30  ;;  %279 = vrot.lane.b32.xlu1 %v275_v33, %s1897_s12 }
  0x94   : > { %v351_v41 = vpop.permute.xlu0 %350  ;;  %v740_v54 = vpop.permute.xlu1 %739 }
  0x95   : > { %v354_v44 = vmul.f32 %v351_v41, %v2168_v40  ;;  %v353_v48 = vmul.f32 %v351_v41, %v2159_v36  ;;  %v742_v57 = vmul.f32 %v740_v54, %v2151_v30  ;;  %v743_v59 = vmul.f32 %v740_v54, %v2145_v27 }
  0x96   : > { %v676_v36 = vmul.f32 %v2170_v42, %v2184_v50 }
  0x97   : > { %336 = vrot.lane.b32.xlu0 %v332_v39, %s1897_s12  ;;  %302 = vrot.lane.b32.xlu1 %v297_v38, %s1898_s30 }
  0x98   : > { %v685_v45 = vpop.permute.xlu0 %684  ;;  %v2196_v58 = vpop.permute.xlu1 %783 }
  0x99   : > { %v688_v49 = vmul.f32 %v685_v45, %v2177_v46  ;;  %v687_v52 = vmul.f32 %v685_v45, %v2184_v50 }
  0x9b   : > { %359 = vrot.lane.b32.xlu0 %v354_v44, %s1898_s30  ;;  %338 = vrot.lane.b32.xlu1 %v333_v43, %s1897_s12 }
  0x9c   : > { %v2186_v51 = vpop.permute.xlu0 %726  ;;  %v818_v2 = vpop.permute.xlu1 %817 }
  0x9d   : > { %v820_v4 = vmul.f32 %v818_v2, %v2210_v1  ;;  %v821_v5 = vmul.f32 %v818_v2, %v2203_v61 }
  0x9f   : > { %693 = vrot.lane.b32.xlu0 %v688_v49, %s1898_s30  ;;  %357 = vrot.lane.b32.xlu1 %v353_v48, %s1898_s30  ;;  %v677_v48 = vmul.f32 %v2170_v42, %v2177_v46 }
  0xa0   : > { %v761_v55 = vpop.permute.xlu0 %760 }
  0xa1   : > { %v764_v60 = vmul.f32 %v761_v55, %v2145_v27  ;;  %v763_v63 = vmul.f32 %v761_v55, %v2151_v30  ;;  %v729_v55 = vmul.f32 %v2186_v51, %v2151_v30 }
  0xa3   : > { %691 = vrot.lane.b32.xlu1 %v687_v52, %s1898_s30  ;;  %712 = vrot.lane.b32.xlu0 %v708_v53, %s1899_s5 }
  0xa4   : > { %v797_v62 = vpop.permute.xlu0 %796 }
  0xa5   : > { %v800_v0 = vmul.f32 %v797_v62, %v2203_v61  ;;  %v799_v3 = vmul.f32 %v797_v62, %v2210_v1 }
  0xa7   : > { %714 = vrot.lane.b32.xlu1 %v709_v56, %s1899_s5  ;;  %746 = vrot.lane.b32.xlu0 %v742_v57, %s1898_s30  ;;  %v730_v56 = vmul.f32 %v2186_v51, %v2145_v27  ;;  %v787_v27 = vmul.f32 %v2196_v58, %v2203_v61 }
  0xab   : > { %748 = vrot.lane.b32.xlu1 %v743_v59, %s1898_s30  ;;  %769 = vrot.lane.b32.xlu0 %v764_v60, %s1899_s5 }
  0xaf   : > { %767 = vrot.lane.b32.xlu1 %v763_v63, %s1899_s5  ;;  %805 = vrot.lane.b32.xlu0 %v800_v0, %s1898_s30  ;;  %v786_v0 = vmul.f32 %v2196_v58, %v2210_v1 }
  0xb3   : > { %803 = vrot.lane.b32.xlu1 %v799_v3, %s1898_s30  ;;  %824 = vrot.lane.b32.xlu0 %v820_v4, %s1899_s5 }
  0xb7   : > { %826 = vrot.lane.b32.xlu1 %v821_v5, %s1899_s5 }
  0xf9   : > { %v223_v6 = vpop.permute.xlu1 %222 }
  0xfa   : > { %v228_v12 = vadd.f32 %v223_v6, %v207_v10 }
  0xfd   : > { %v246_v8 = vpop.permute.xlu0 %245  ;;  %v225_v9 = vpop.permute.xlu1 %224 }
  0xfe   : > { %v229_v11 = vadd.f32 %v225_v9, %v208_v7 }
 0x100   : > { %v250_v13 = vadd.f32 %v246_v8, %v229_v11 }
 0x101   : > { %v282_v14 = vpop.permute.xlu0 %281  ;;  %v244_v15 = vpop.permute.xlu1 %243 }
 0x102   : > { %v249_v20 = vadd.f32 %v244_v15, %v228_v12  ;;  %v265_v22 = vadd.f32 %v263_v17, %v250_v13 }
 0x104   : > { %v264_v24 = vadd.f32 %v262_v16, %v249_v20  ;;  %v286_v19 = vadd.f32 %v282_v14, %v265_v22 }
 0x105   : > { %v301_v23 = vpop.permute.xlu0 %300  ;;  %v280_v25 = vpop.permute.xlu1 %279 }
 0x106   : > { %v285_v26 = vadd.f32 %v280_v25, %v264_v24 }
 0x108   : > { %v306_v28 = vadd.f32 %v301_v23, %v285_v26 }
 0x109   : > { %v337_v29 = vpop.permute.xlu0 %336  ;;  %v303_v31 = vpop.permute.xlu1 %302 }
 0x10a   : > { %v321_v33 = vadd.f32 %v319_v18, %v306_v28  ;;  %v307_v34 = vadd.f32 %v303_v31, %v286_v19 }
 0x10c   : > { %v322_v35 = vadd.f32 %v320_v32, %v307_v34  ;;  %v342_v41 = vadd.f32 %v337_v29, %v321_v33 }
 0x10d   : > { %v360_v21 = vpop.permute.xlu0 %359  ;;  %v339_v38 = vpop.permute.xlu1 %338 }
 0x10e   : > { %v343_v39 = vadd.f32 %v339_v38, %v322_v35 }
 0x110   : > { %v2232_v43 = vadd.f32 %v360_v21, %v343_v39 }
 0x111   : > { %v694_v44 = vpop.permute.xlu0 %693  ;;  %v358_v45 = vpop.permute.xlu1 %357 }
 0x112   : > { %v2234_v47 = vadd.f32 %v358_v45, %v342_v41  ;;  %369 = vrot.lane.b32.xlu0 %v2232_v43, %s1898_s30  ;;  %v698_v52 = vadd.f32 %v694_v44, %v677_v48 }
 0x114   : > { %367 = vrot.lane.b32.xlu1 %v2234_v47, %s1898_s30 }
 0x115   : > { %v692_v37 = vpop.permute.xlu1 %691  ;;  %v713_v40 = vpop.permute.xlu0 %712 }
 0x116   : > { %v697_v49 = vadd.f32 %v692_v37, %v676_v36  ;;  %375 = vrot.lane.b32.xlu0 %v2232_v43, %s1900_s7 }
 0x118   : > { %v718_v53 = vadd.f32 %v713_v40, %v697_v49  ;;  %373 = vrot.lane.b32.xlu1 %v2234_v47, %s1900_s7 }
 0x119   : > { %v715_v54 = vpop.permute.xlu1 %714  ;;  %v747_v50 = vpop.permute.xlu0 %746 }
 0x11a   : > { %v719_v57 = vadd.f32 %v715_v54, %v698_v52  ;;  %381 = vrot.lane.b32.xlu0 %v2232_v43, %s3116_s8  ;;  %v731_v42 = vadd.f32 %v729_v55, %v718_v53 }
 0x11c   : > { %379 = vrot.lane.b32.xlu1 %v2234_v47, %s3116_s8  ;;  %v732_v46 = vadd.f32 %v730_v56, %v719_v57  ;;  %v752_v30 = vadd.f32 %v747_v50, %v731_v42  ;;  %s1911_s8 = smov 40  }
 0x11d   : > { %v749_v59 = vpop.permute.xlu1 %748  ;;  %v770_v60 = vpop.permute.xlu0 %769 }
 0x11e   : > { %v753_v62 = vadd.f32 %v749_v59, %v732_v46  ;;  %387 = vrot.lane.b32.xlu0 %v2232_v43, %s3114_s9  ;;  %v1677_v59 = vld [vmem:[%s3110_s1 + $0x13] ss:$0 sm:$0xff] }
 0x120   : > { %v774_v51 = vadd.f32 %v770_v60, %v753_v62  ;;  %385 = vrot.lane.b32.xlu1 %v2234_v47, %s3114_s9  ;;  %s3118_s9 = smov 24   ;;  %v1678_v62 = vld [vmem:[%s3110_s1 + $0x14] ss:$0 sm:$0xff] }
 0x121   : > { %v768_v63 = vpop.permute.xlu1 %767  ;;  %v806_v58 = vpop.permute.xlu0 %805 }
 0x122   : > { %v773_v2 = vadd.f32 %v768_v63, %v752_v30  ;;  %393 = vrot.lane.b32.xlu0 %v2232_v43, %s1903_s11  ;;  %v2266_v3 = vadd.f32 %v787_v27, %v774_v51  ;;  %v1680_v51 = vld [vmem:[%s3110_s1 + $0x16] ss:$0 sm:$0xff] }
 0x124   : > { %391 = vrot.lane.b32.xlu1 %v2234_v47, %s1903_s11  ;;  %v2270_v61 = vadd.f32 %v786_v0, %v773_v2  ;;  %v810_v13 = vadd.f32 %v806_v58, %v2266_v3  ;;  %v1681_v0 = vld [vmem:[%s3110_s1 + $0x17] ss:$0 sm:$0xff] }
 0x125   : > { %v804_v1 = vpop.permute.xlu1 %803  ;;  %v825_v4 = vpop.permute.xlu0 %824 }
 0x126   : > { %399 = vrot.lane.b32.xlu0 %v2232_v43, %s1904_s14  ;;  %v809_v10 = vadd.f32 %v804_v1, %v2270_v61  ;;  %v1683_v61 = vld [vmem:[%s3110_s1 + $0x19] ss:$0 sm:$0xff]  ;;  %v1684_v1 = vld [vmem:[%s3110_s1 + $0x1a] ss:$0 sm:$0xff] }
 0x128   : > { %397 = vrot.lane.b32.xlu1 %v2234_v47, %s1904_s14  ;;  %v2351_v14 = vadd.f32 %v825_v4, %v809_v10 }
 0x129   : > { %v827_v5 = vpop.permute.xlu1 %826 }
 0x12a   : > { %405 = vrot.lane.b32.xlu0 %v2232_v43, %s1905_s20  ;;  %v2356_v16 = vadd.f32 %v827_v5, %v810_v13 }
 0x12c   : > { %403 = vrot.lane.b32.xlu1 %v2234_v47, %s1905_s20 }
 0x12e   : > { %411 = vrot.lane.b32.xlu0 %v2232_v43, %s1906_s22 }
 0x130   : > { %409 = vrot.lane.b32.xlu1 %v2234_v47, %s1906_s22 }
 0x132   : > { %445 = vrot.lane.b32.xlu0 %v2232_v43, %s1907_s23 }
 0x134   : > { %443 = vrot.lane.b32.xlu1 %v2234_v47, %s1907_s23  ;;  %s1912_s23 = smov 56  }
 0x136   : > { %451 = vrot.lane.b32.xlu0 %v2232_v43, %s1908_s27 }
 0x138   : > { %449 = vrot.lane.b32.xlu1 %v2234_v47, %s1908_s27  ;;  %s1913_s27 = smov 72  }
 0x13a   : > { %457 = vrot.lane.b32.xlu0 %v2232_v43, %s1909_s28 }
 0x13c   : > { %455 = vrot.lane.b32.xlu1 %v2234_v47, %s1909_s28  ;;  %s1914_s28 = smov 88  }
 0x13e   : > { %463 = vrot.lane.b32.xlu0 %v2232_v43, %s3118_s9 }
 0x140   : > { %461 = vrot.lane.b32.xlu1 %v2234_v47, %s3118_s9  ;;  %s1915_s9 = smov 82  }
 0x142   : > { %469 = vrot.lane.b32.xlu0 %v2232_v43, %s1911_s8 }
 0x144   : > { %467 = vrot.lane.b32.xlu1 %v2234_v47, %s1911_s8  ;;  %s1916_s8 = smov 98  }
 0x146   : > { %475 = vrot.lane.b32.xlu0 %v2232_v43, %s1912_s23 }
 0x148   : > { %473 = vrot.lane.b32.xlu1 %v2234_v47, %s1912_s23  ;;  %s1917_s23 = smov 114  }
 0x14a   : > { %481 = vrot.lane.b32.xlu0 %v2232_v43, %s1913_s27 }
 0x14c   : > { %479 = vrot.lane.b32.xlu1 %v2234_v47, %s1913_s27  ;;  %s1918_s27 = smov 18  }
 0x14e   : > { %487 = vrot.lane.b32.xlu0 %v2232_v43, %s1914_s28 }
 0x150   : > { %485 = vrot.lane.b32.xlu1 %v2234_v47, %s1914_s28  ;;  %s1920_s28 = smov 50  }
 0x152   : > { %516 = vrot.lane.b32.xlu0 %v2232_v43, %s1915_s9 }
 0x154   : > { %514 = vrot.lane.b32.xlu1 %v2234_v47, %s1915_s9  ;;  %s1919_s9 = smov 34  }
 0x156   : > { %522 = vrot.lane.b32.xlu0 %v2232_v43, %s1916_s8 }
 0x158   : > { %520 = vrot.lane.b32.xlu1 %v2234_v47, %s1916_s8  ;;  %s1921_s8 = smov 66  }
 0x15a   : > { %528 = vrot.lane.b32.xlu0 %v2232_v43, %s1917_s23 }
 0x15c   : > { %526 = vrot.lane.b32.xlu1 %v2234_v47, %s1917_s23  ;;  %s1923_s23 = smov 76  }
 0x15e   : > { %534 = vrot.lane.b32.xlu0 %v2232_v43, %s1892_s29 }
 0x160   : > { %532 = vrot.lane.b32.xlu1 %v2234_v47, %s1892_s29  ;;  %s1922_s29 = smov 60  }
 0x162   : > { %540 = vrot.lane.b32.xlu0 %v2232_v43, %s1918_s27 }
 0x164   : > { %538 = vrot.lane.b32.xlu1 %v2234_v47, %s1918_s27  ;;  %s1924_s27 = smov 92  }
 0x166   : > { %546 = vrot.lane.b32.xlu0 %v2232_v43, %s1919_s9 }
 0x168   : > { %544 = vrot.lane.b32.xlu1 %v2234_v47, %s1919_s9  ;;  %s1925_s9 = smov 108  }
 0x16a   : > { %552 = vrot.lane.b32.xlu0 %v2232_v43, %s1920_s28 }
 0x16c   : > { %550 = vrot.lane.b32.xlu1 %v2234_v47, %s1920_s28  ;;  %s1926_s28 = smov 12  }
 0x16e   : > { %558 = vrot.lane.b32.xlu0 %v2232_v43, %s1921_s8 }
 0x170   : > { %556 = vrot.lane.b32.xlu1 %v2234_v47, %s1921_s8  ;;  %s1927_s8 = smov 28  }
 0x172   : > { %587 = vrot.lane.b32.xlu0 %v2232_v43, %s1922_s29 }
 0x174   : > { %585 = vrot.lane.b32.xlu1 %v2234_v47, %s1922_s29  ;;  %s1929_s29 = smov 15  }
 0x176   : > { %593 = vrot.lane.b32.xlu0 %v2232_v43, %s1923_s23 }
 0x178   : > { %591 = vrot.lane.b32.xlu1 %v2234_v47, %s1923_s23  ;;  %s1930_s23 = smov 31  }
 0x17a   : > { %599 = vrot.lane.b32.xlu0 %v2232_v43, %s1924_s27 }
 0x17c   : > { %597 = vrot.lane.b32.xlu1 %v2234_v47, %s1924_s27  ;;  %s1931_s27 = smov 47  }
 0x17e   : > { %605 = vrot.lane.b32.xlu0 %v2232_v43, %s1925_s9 }
 0x180   : > { %603 = vrot.lane.b32.xlu1 %v2234_v47, %s1925_s9  ;;  %s1933_s9 = smov 79  }
 0x182   : > { %611 = vrot.lane.b32.xlu0 %v2232_v43, %s1899_s5 }
 0x184   : > { %v2330_v6 = vpop.permute.xlu0 %369  ;;  %609 = vrot.lane.b32.xlu1 %v2234_v47, %s1899_s5  ;;  %s1928_s5 = smov 44  }
 0x186   : > { %617 = vrot.lane.b32.xlu0 %v2232_v43, %s1926_s28  ;;  %v2335_v7 = vpop.permute.xlu1 %367 }
 0x188   : > { %v2337_v8 = vpop.permute.xlu0 %375  ;;  %615 = vrot.lane.b32.xlu1 %v2234_v47, %s1926_s28  ;;  %s1934_s28 = smov 95  }
 0x189   : > { %v417_v10 = vsel %vm415_vm0, %v2330_v6, %v2337_v8 }
 0x18a   : > { %623 = vrot.lane.b32.xlu0 %v2232_v43, %s1927_s8  ;;  %v2341_v9 = vpop.permute.xlu1 %373 }
 0x18b   : > { %v416_v13 = vsel %vm415_vm0, %v2335_v7, %v2341_v9 }
 0x18c   : > { %v2344_v11 = vpop.permute.xlu0 %381  ;;  %621 = vrot.lane.b32.xlu1 %v2234_v47, %s1927_s8  ;;  %s1935_s8 = smov 111  }
 0x18e   : > { %629 = vrot.lane.b32.xlu0 %v2232_v43, %s1928_s5  ;;  %v2348_v12 = vpop.permute.xlu1 %379 }
 0x190   : > { %v2353_v15 = vpop.permute.xlu0 %387  ;;  %627 = vrot.lane.b32.xlu1 %v2234_v47, %s1928_s5  ;;  %s1936_s5 = smov 105  }
 0x192   : > { %834 = vrot.lane.b32.xlu0 %v2351_v14, %s1897_s12  ;;  %v2360_v17 = vpop.permute.xlu1 %385 }
 0x194   : > { %v2362_v20 = vpop.permute.xlu0 %393  ;;  %836 = vrot.lane.b32.xlu1 %v2356_v16, %s1897_s12  ;;  %s1932_s12 = smov 63  }
 0x196   : > { %840 = vrot.lane.b32.xlu0 %v2351_v14, %s1929_s29  ;;  %v2367_v22 = vpop.permute.xlu1 %391 }
 0x198   : > { %v2369_v24 = vpop.permute.xlu0 %399  ;;  %842 = vrot.lane.b32.xlu1 %v2356_v16, %s1929_s29  ;;  %s1937_s29 = smov 121  }
 0x19a   : > { %846 = vrot.lane.b32.xlu0 %v2351_v14, %s1930_s23  ;;  %v2373_v23 = vpop.permute.xlu1 %397 }
 0x19c   : > { %v2375_v25 = vpop.permute.xlu0 %405  ;;  %848 = vrot.lane.b32.xlu1 %v2356_v16, %s1930_s23  ;;  %s1938_s23 = smov 9  }
 0x19e   : > { %852 = vrot.lane.b32.xlu0 %v2351_v14, %s1931_s27  ;;  %v2379_v26 = vpop.permute.xlu1 %403 }
 0x1a0   : > { %v2381_v18 = vpop.permute.xlu0 %411  ;;  %854 = vrot.lane.b32.xlu1 %v2356_v16, %s1931_s27  ;;  %s1939_s27 = smov 25  }
 0x1a2   : > { %858 = vrot.lane.b32.xlu0 %v2351_v14, %s1932_s12  ;;  %v2385_v19 = vpop.permute.xlu1 %409 }
 0x1a4   : > { %v2387_v28 = vpop.permute.xlu0 %445  ;;  %860 = vrot.lane.b32.xlu1 %v2356_v16, %s1932_s12  ;;  %s1940_s12 = smov 41  }
 0x1a6   : > { %864 = vrot.lane.b32.xlu0 %v2351_v14, %s1933_s9  ;;  %v2391_v29 = vpop.permute.xlu1 %443 }
 0x1a8   : > { %v2393_v31 = vpop.permute.xlu0 %451  ;;  %866 = vrot.lane.b32.xlu1 %v2356_v16, %s1933_s9  ;;  %s1941_s9 = smov 57  }
 0x1aa   : > { %870 = vrot.lane.b32.xlu0 %v2351_v14, %s1934_s28  ;;  %v2397_v32 = vpop.permute.xlu1 %449 }
 0x1ac   : > { %v2399_v33 = vpop.permute.xlu0 %457  ;;  %872 = vrot.lane.b32.xlu1 %v2356_v16, %s1934_s28  ;;  %s1942_s28 = smov 73  }
 0x1ae   : > { %876 = vrot.lane.b32.xlu0 %v2351_v14, %s1935_s8  ;;  %v2403_v34 = vpop.permute.xlu1 %455 }
 0x1b0   : > { %v2405_v35 = vpop.permute.xlu0 %463  ;;  %878 = vrot.lane.b32.xlu1 %v2356_v16, %s1935_s8  ;;  %s1943_s8 = smov 89  }
 0x1b2   : > { %903 = vrot.lane.b32.xlu0 %v2351_v14, %s1936_s5  ;;  %v2409_v21 = vpop.permute.xlu1 %461 }
 0x1b4   : > { %v2411_v38 = vpop.permute.xlu0 %469  ;;  %905 = vrot.lane.b32.xlu1 %v2356_v16, %s1936_s5  ;;  %s1944_s5 = smov 83  }
 0x1b6   : > { %909 = vrot.lane.b32.xlu0 %v2351_v14, %s1937_s29  ;;  %v2415_v39 = vpop.permute.xlu1 %467 }
 0x1b8   : > { %v2417_v41 = vpop.permute.xlu0 %475  ;;  %911 = vrot.lane.b32.xlu1 %v2356_v16, %s1937_s29  ;;  %s1945_s29 = smov 99  }
 0x1ba   : > { %915 = vrot.lane.b32.xlu0 %v2351_v14, %s1938_s23  ;;  %v2421_v43 = vpop.permute.xlu1 %473 }
 0x1bc   : > { %v2423_v44 = vpop.permute.xlu0 %481  ;;  %917 = vrot.lane.b32.xlu1 %v2356_v16, %s1938_s23  ;;  %s1946_s23 = smov 115  }
 0x1be   : > { %921 = vrot.lane.b32.xlu0 %v2351_v14, %s1939_s27  ;;  %v2427_v45 = vpop.permute.xlu1 %479 }
 0x1c0   : > { %v2429_v47 = vpop.permute.xlu0 %487  ;;  %923 = vrot.lane.b32.xlu1 %v2356_v16, %s1939_s27  ;;  %s1956_s27 = smov 125  }
 0x1c2   : > { %927 = vrot.lane.b32.xlu0 %v2351_v14, %s1940_s12  ;;  %v2433_v36 = vpop.permute.xlu1 %485 }
 0x1c4   : > { %v2435_v37 = vpop.permute.xlu0 %516  ;;  %929 = vrot.lane.b32.xlu1 %v2356_v16, %s1940_s12 }
 0x1c6   : > { %933 = vrot.lane.b32.xlu0 %v2351_v14, %s1941_s9  ;;  %v2439_v40 = vpop.permute.xlu1 %514 }
 0x1c8   : > { %v2441_v48 = vpop.permute.xlu0 %522  ;;  %935 = vrot.lane.b32.xlu1 %v2356_v16, %s1941_s9  ;;  %s1953_s9 = smov 77  }
 0x1ca   : > { %939 = vrot.lane.b32.xlu0 %v2351_v14, %s1942_s28  ;;  %v2445_v49 = vpop.permute.xlu1 %520 }
 0x1cc   : > { %v2447_v52 = vpop.permute.xlu0 %528  ;;  %941 = vrot.lane.b32.xlu1 %v2356_v16, %s1942_s28  ;;  %s1948_s28 = smov 19  }
 0x1ce   : > { %945 = vrot.lane.b32.xlu0 %v2351_v14, %s1943_s8  ;;  %v2451_v53 = vpop.permute.xlu1 %526 }
 0x1d0   : > { %v2453_v54 = vpop.permute.xlu0 %534  ;;  %947 = vrot.lane.b32.xlu1 %v2356_v16, %s1943_s8  ;;  %s1947_s8 = smov 6  }
 0x1d2   : > { %974 = vrot.lane.b32.xlu0 %v2351_v14, %s1944_s5  ;;  %v2457_v50 = vpop.permute.xlu1 %532 }
 0x1d4   : > { %v2459_v55 = vpop.permute.xlu0 %540  ;;  %976 = vrot.lane.b32.xlu1 %v2356_v16, %s1944_s5  ;;  %s1966_s5 = smov 96  }
 0x1d6   : > { %980 = vrot.lane.b32.xlu0 %v2351_v14, %s1945_s29  ;;  %v2463_v56 = vpop.permute.xlu1 %538 }
 0x1d8   : > { %v2465_v57 = vpop.permute.xlu0 %546  ;;  %982 = vrot.lane.b32.xlu1 %v2356_v16, %s1945_s29  ;;  %s1954_s29 = smov 93  }
 0x1da   : > { %986 = vrot.lane.b32.xlu0 %v2351_v14, %s1946_s23  ;;  %v2469_v42 = vpop.permute.xlu1 %544 }
 0x1dc   : > { %v2471_v46 = vpop.permute.xlu0 %552  ;;  %988 = vrot.lane.b32.xlu1 %v2356_v16, %s1946_s23  ;;  %s1955_s23 = smov 109  }
 0x1de   : > { %992 = vrot.lane.b32.xlu0 %v2351_v14, %s1893_s10  ;;  %v2479_v60 = vpop.permute.xlu1 %550 }
 0x1e0   : > { %v2484_v27 = vpop.permute.xlu0 %558  ;;  %1140 = vrot.lane.b32.xlu1 %v1677_v59, %s1893_s10 }
 0x1e2   : > { %1161 = vrot.lane.b32.xlu0 %v1678_v62, %s1947_s8  ;;  %v2487_v30 = vpop.permute.xlu1 %556  ;;  %v420_v62 = vsel %vm418_vm1, %v417_v10, %v2344_v11  ;;  %v492_v11 = vsel %vm415_vm0, %v2387_v28, %v2393_v31 }
 0x1e4   : > { %v2492_v63 = vpop.permute.xlu0 %587  ;;  %994 = vrot.lane.b32.xlu1 %v2356_v16, %s1893_s10 }
 0x1e6   : > { %1191 = vrot.lane.b32.xlu0 %v1680_v51, %s1893_s10  ;;  %v2500_v2 = vpop.permute.xlu1 %585  ;;  %v419_v51 = vsel %vm418_vm1, %v416_v13, %v2348_v12 }
 0x1e7   : > { %v422_v6 = vsel %vm421_vm2, %v419_v51, %v2360_v17  ;;  %v494_v17 = vsel %vm418_vm1, %v492_v11, %v2399_v33 }
 0x1e8   : > { %v2502_v3 = vpop.permute.xlu0 %593  ;;  %1212 = vrot.lane.b32.xlu1 %v1681_v0, %s1947_s8  ;;  %v423_v0 = vsel %vm421_vm2, %v420_v62, %v2353_v15  ;;  %v425_v9 = vsel %vm424_vm3, %v422_v6, %v2367_v22  ;;  %v491_v22 = vsel %vm415_vm0, %v2391_v29, %v2397_v32 }
 0x1e9   : > { %v426_v8 = vsel %vm424_vm3, %v423_v0, %v2362_v20  ;;  %v428_v15 = vsel %vm427_vm4, %v425_v9, %v2373_v23  ;;  %v563_v23 = vsel %vm415_vm0, %v2435_v37, %v2441_v48  ;;  %v493_v31 = vsel %vm418_vm1, %v491_v22, %v2403_v34 }
 0x1ea   : > { %998 = vrot.lane.b32.xlu0 %v2351_v14, %s1948_s28  ;;  %v2508_v58 = vpop.permute.xlu1 %591  ;;  %v429_v12 = vsel %vm427_vm4, %v426_v8, %v2369_v24  ;;  %v496_v24 = vsel %vm421_vm2, %v494_v17, %v2405_v35  ;;  %v431_v28 = vsel %vm430_vm5, %v428_v15, %v2379_v26  ;;  %v565_v33 = vsel %vm418_vm1, %v563_v23, %v2447_v52 }
 0x1eb   : > { %v432_v20 = vsel %vm430_vm5, %v429_v12, %v2375_v25  ;;  %v498_v25 = vsel %vm424_vm3, %v496_v24, %v2411_v38  ;;  %v495_v32 = vsel %vm421_vm2, %v493_v31, %v2409_v21  ;;  %v562_v26 = vsel %vm415_vm0, %v2439_v40, %v2445_v49  ;;  %v1658_v49 = vld [vmem:[%s3111_s2 + $0x1] ss:$0 sm:$0xff]  ;;  %v1661_v24 = vld [vmem:[%s3112_s3] ss:$0 sm:$0xff] }
 0x1ec   : > { %v2513_v4 = vpop.permute.xlu0 %599  ;;  %1244 = vrot.lane.b32.xlu1 %v1683_v61, %s1893_s10  ;;  %s1949_s10 = smov 35   ;;  %v500_v35 = vsel %vm427_vm4, %v498_v25, %v2417_v41  ;;  %v567_v34 = vsel %vm421_vm2, %v565_v33, %v2453_v54  ;;  %v497_v38 = vsel %vm424_vm3, %v495_v32, %v2415_v39  ;;  %v564_v48 = vsel %vm418_vm1, %v562_v26, %v2451_v53  ;;  %v1657_v53 = vld [vmem:[%s3111_s2] ss:$0 sm:$0xff] }
 0x1ed   : > { %v502_v37 = vsel %vm430_vm5, %v500_v35, %v2423_v44  ;;  %v569_v21 = vsel %vm424_vm3, %v567_v34, %v2459_v55  ;;  %v499_v40 = vsel %vm427_vm4, %v497_v38, %v2421_v43  ;;  %v566_v44 = vsel %vm421_vm2, %v564_v48, %v2457_v50 }
 0x1ee   : > { %1265 = vrot.lane.b32.xlu0 %v1684_v1, %s1947_s8  ;;  %v2516_v5 = vpop.permute.xlu1 %597  ;;  %s1950_s8 = smov 51   ;;  %v504_v39 = vsel %vm433_vm6, %v502_v37, %v2429_v47  ;;  %v571_v52 = vsel %vm427_vm4, %v569_v21, %v2465_v57  ;;  %v435_v43 = vsel %vm433_vm6, %v432_v20, %v2381_v18  ;;  %v501_v54 = vsel %vm430_vm5, %v499_v40, %v2427_v45  ;;  %v1659_v18 = vld [vmem:[%s3111_s2 + $0x2] ss:$0 sm:$0xff] }
 0x1ef   : > { %v568_v55 = vsel %vm424_vm3, %v566_v44, %v2463_v56  ;;  %v573_v47 = vsel %vm430_vm5, %v571_v52, %v2471_v46  ;;  %v503_v57 = vsel %vm433_vm6, %v501_v54, %v2433_v36  ;;  %v634_v56 = vsel %vm415_vm0, %v2492_v63, %v2502_v3 }
 0x1f0   : > { %v2524_v59 = vpop.permute.xlu0 %605  ;;  %1000 = vrot.lane.b32.xlu1 %v2356_v16, %s1948_s28  ;;  %s1951_s28 = smov 67   ;;  %v570_v1 = vsel %vm427_vm4, %v568_v55, %v2469_v42  ;;  %v575_v45 = vsel %vm433_vm6, %v573_v47, %v2484_v27  ;;  %v434_v46 = vsel %vm433_vm6, %v431_v28, %v2385_v19  ;;  %v511_v10 = vmul.f32 %v1658_v49, %v504_v39 }
 0x1f1   : > { %v572_v36 = vsel %vm430_vm5, %v570_v1, %v2479_v60  ;;  %v636_v42 = vsel %vm418_vm1, %v634_v56, %v2513_v4  ;;  %v442_v62 = vmul.f32 %v1657_v53, %v435_v43  ;;  %v633_v63 = vsel %vm415_vm0, %v2500_v2, %v2508_v58 }
 0x1f2   : > { %1004 = vrot.lane.b32.xlu0 %v2351_v14, %s1949_s10  ;;  %v2536_v7 = vpop.permute.xlu1 %603  ;;  %v574_v27 = vsel %vm433_vm6, %v572_v36, %v2487_v30  ;;  %v638_v19 = vsel %vm421_vm2, %v636_v42, %v2524_v59  ;;  %v510_v3 = vmul.f32 %v1658_v49, %v503_v57  ;;  %v582_v51 = vmul.f32 %v1659_v18, %v575_v45  ;;  %v1660_v59 = vld [vmem:[%s3111_s2 + $0x3] ss:$0 sm:$0xff] }
 0x1f3   : > { %v635_v60 = vsel %vm418_vm1, %v633_v63, %v2516_v5  ;;  %v441_v30 = vmul.f32 %v1657_v53, %v434_v46  ;;  %v513_v6 = vadd.f32 %v511_v10, %v442_v62  ;;  %v581_v5 = vmul.f32 %v1659_v18, %v574_v27 }
 0x1f4   : > { %v612_v61 = vpop.permute.xlu0 %611  ;;  %1006 = vrot.lane.b32.xlu1 %v2356_v16, %s1949_s10  ;;  %s1952_s10 = smov 61   ;;  %v637_v2 = vsel %vm421_vm2, %v635_v60, %v2536_v7 }
 0x1f5   : > { %v640_v4 = vsel %vm424_vm3, %v638_v19, %v612_v61  ;;  %v512_v15 = vadd.f32 %v510_v3, %v441_v30  ;;  %v584_v17 = vadd.f32 %v582_v51, %v513_v6 }
 0x1f6   : > { %1010 = vrot.lane.b32.xlu0 %v2351_v14, %s1950_s8  ;;  %v610_v29 = vpop.permute.xlu1 %609 }
 0x1f7   : > { %v639_v8 = vsel %vm424_vm3, %v637_v2, %v610_v29  ;;  %v583_v28 = vadd.f32 %v581_v5, %v512_v15 }
 0x1f8   : > { %v618_v41 = vpop.permute.xlu0 %617  ;;  %1012 = vrot.lane.b32.xlu1 %v2356_v16, %s1950_s8  ;;  %s188_s8 = sand.u32 1, %s1882_s16  }
 0x1f9   : > { %v642_v58 = vsel %vm427_vm4, %v640_v4, %v618_v41  ;;  %s1693_s12 = smul.u32 48, %s188_s8 }
 0x1fa   : > { %1016 = vrot.lane.b32.xlu0 %v2351_v14, %s1951_s28  ;;  %v616_v50 = vpop.permute.xlu1 %615 }
 0x1fb   : > { %v641_v12 = vsel %vm427_vm4, %v639_v8, %v616_v50  ;;  %v2729_v8 = vld [vmem:[%s3111_s2 + $0x4] ss:$0 sm:$0xff] }
 0x1fc   : > { %v624_v13 = vpop.permute.xlu0 %623  ;;  %1018 = vrot.lane.b32.xlu1 %v2356_v16, %s1951_s28  ;;  %s1959_s28 = smov 45  }
 0x1fd   : > { %v644_v9 = vsel %vm430_vm5, %v642_v58, %v624_v13 }
 0x1fe   : > { %1045 = vrot.lane.b32.xlu0 %v2351_v14, %s1952_s10  ;;  %v622_v0 = vpop.permute.xlu1 %621 }
 0x1ff   : > { %v643_v61 = vsel %vm430_vm5, %v641_v12, %v622_v0 }
 0x200   : > { %v630_v11 = vpop.permute.xlu0 %629  ;;  %1047 = vrot.lane.b32.xlu1 %v2356_v16, %s1952_s10  ;;  %s2666_s10 = scalar_lea.vmem [#allocation2], %s1693_s12  ;;  %s1957_s12 = smov 13  }
 0x201   : > { %v646_v7 = vsel %vm433_vm6, %v644_v9, %v630_v11  ;;  %v2734_v9 = vld [vmem:[%s3111_s2 + $0x5] ss:$0 sm:$0xff] }
 0x202   : > { %v653_v20 = vmul.f32 %v1660_v59, %v646_v7  ;;  %1051 = vrot.lane.b32.xlu0 %v2351_v14, %s1953_s9  ;;  %v628_v22 = vpop.permute.xlu1 %627 }
 0x203   : > { %v645_v23 = vsel %vm433_vm6, %v643_v61, %v628_v22 }
 0x204   : > { %v655_v31 = vadd.f32 %v653_v20, %v584_v17  ;;  %v652_v25 = vmul.f32 %v1660_v59, %v645_v23  ;;  %v2662_v33 = vpop.permute.xlu0 %834  ;;  %1053 = vrot.lane.b32.xlu1 %v2356_v16, %s1953_s9  ;;  %s1958_s9 = smov 29  }
 0x206   : > { %v662_v29 = vadd.f32 %v1661_v24, %v655_v31  ;;  %v654_v32 = vadd.f32 %v652_v25, %v583_v28  ;;  %1057 = vrot.lane.b32.xlu0 %v2351_v14, %s1954_s29  ;;  %v837_v35 = vpop.permute.xlu1 %836  ;;  %v2750_v31 = vld [vmem:[%s2130_s6] sm:$0xff]  ;;  %v2753_v25 = vld [vmem:[%s2130_s6 + $0x8] sm:$0xff] }
 0x208   : > { %664 = vst [vmem:[%s2666_s10 + $0x18] sm:$0xff] %v662_v29  ;;  %v661_v26 = vadd.f32 %v1661_v24, %v654_v32  ;;  %v2669_v34 = vpop.permute.xlu0 %840  ;;  %1059 = vrot.lane.b32.xlu1 %v2356_v16, %s1954_s29  ;;  %s1967_s29 = smov 112  }
 0x20a   : > { %663 = vst [vmem:[%s2666_s10] sm:$0xff] %v661_v26  ;;  %1063 = vrot.lane.b32.xlu0 %v2351_v14, %s1955_s23  ;;  %v843_v38 = vpop.permute.xlu1 %842 }
 0x20b   : > { %v883_v42 = vsel %vm415_vm0, %v837_v35, %v843_v38 }
 0x20c   : > { %v2674_v37 = vpop.permute.xlu0 %846  ;;  %1065 = vrot.lane.b32.xlu1 %v2356_v16, %s1955_s23  ;;  %s1961_s23 = smov 16  }
 0x20e   : > { %1069 = vrot.lane.b32.xlu0 %v2351_v14, %s1956_s27  ;;  %v849_v48 = vpop.permute.xlu1 %848 }
 0x20f   : > { %v885_v13 = vsel %vm418_vm1, %v883_v42, %v849_v48  ;;  %v2779_v42 = vld [vmem:[%s2130_s6 + $0xe] sm:$0xff] }
 0x210   : > { %v2679_v21 = vpop.permute.xlu0 %852  ;;  %1071 = vrot.lane.b32.xlu1 %v2356_v16, %s1956_s27 }
 0x212   : > { %1075 = vrot.lane.b32.xlu0 %v2351_v14, %s1957_s12  ;;  %v855_v41 = vpop.permute.xlu1 %854 }
 0x213   : > { %v887_v27 = vsel %vm421_vm2, %v885_v13, %v855_v41 }
 0x214   : > { %v2684_v40 = vpop.permute.xlu0 %858  ;;  %1077 = vrot.lane.b32.xlu1 %v2356_v16, %s1957_s12  ;;  %s1962_s12 = smov 32  }
 0x216   : > { %1081 = vrot.lane.b32.xlu0 %v2351_v14, %s1958_s9  ;;  %v861_v49 = vpop.permute.xlu1 %860 }
 0x217   : > { %v889_v19 = vsel %vm424_vm3, %v887_v27, %v861_v49 }
 0x218   : > { %v2688_v39 = vpop.permute.xlu0 %864  ;;  %1083 = vrot.lane.b32.xlu1 %v2356_v16, %s1958_s9  ;;  %s1960_s9 = smov 122  }
 0x21a   : > { %1087 = vrot.lane.b32.xlu0 %v2351_v14, %s1959_s28  ;;  %v867_v44 = vpop.permute.xlu1 %866 }
 0x21b   : > { %v891_v60 = vsel %vm427_vm4, %v889_v19, %v867_v44  ;;  %v2762_v44 = vld [vmem:[%s2130_s6 + $0x3] sm:$0xff] }
 0x21c   : > { %v2693_v52 = vpop.permute.xlu0 %870 }
 0x21e   : > { %v873_v53 = vpop.permute.xlu1 %872 }
 0x21f   : > { %v893_v0 = vsel %vm430_vm5, %v891_v60, %v873_v53 }
 0x220   : > { %v2695_v43 = vpop.permute.xlu0 %876 }
 0x222   : > { %v879_v54 = vpop.permute.xlu1 %878 }
 0x223   : > { %v895_v58 = vsel %vm433_vm6, %v893_v0, %v879_v54  ;;  %v2766_v54 = vld [vmem:[%s2130_s6 + $0xb] sm:$0xff] }
 0x224   : > { %v2697_v55 = vpop.permute.xlu0 %903  ;;  %v902_v12 = vmul.f32 %v2729_v8, %v895_v58 }
 0x226   : > { %v906_v47 = vpop.permute.xlu1 %905 }
 0x228   : > { %v2699_v50 = vpop.permute.xlu0 %909 }
 0x22a   : > { %v912_v57 = vpop.permute.xlu1 %911 }
 0x22b   : > { %v952_v63 = vsel %vm415_vm0, %v906_v47, %v912_v57 }
 0x22c   : > { %v2701_v1 = vpop.permute.xlu0 %915 }
 0x22e   : > { %v918_v18 = vpop.permute.xlu1 %917 }
 0x22f   : > { %v954_v3 = vsel %vm418_vm1, %v952_v63, %v918_v18 }
 0x230   : > { %v2703_v45 = vpop.permute.xlu0 %921 }
 0x232   : > { %v924_v56 = vpop.permute.xlu1 %923 }
 0x233   : > { %v956_v4 = vsel %vm421_vm2, %v954_v3, %v924_v56 }
 0x234   : > { %v2705_v14 = vpop.permute.xlu0 %927 }
 0x236   : > { %v930_v46 = vpop.permute.xlu1 %929 }
 0x237   : > { %v958_v30 = vsel %vm424_vm3, %v956_v4, %v930_v46 }
 0x238   : > { %v2707_v10 = vpop.permute.xlu0 %933 }
 0x23a   : > { %v936_v36 = vpop.permute.xlu1 %935 }
 0x23b   : > { %v960_v59 = vsel %vm427_vm4, %v958_v30, %v936_v36  ;;  %v2776_v36 = vld [vmem:[%s2130_s6 + $0x6] sm:$0xff]  ;;  %s1963_s6 = smov 48  }
 0x23c   : > { %v2711_v62 = vpop.permute.xlu0 %939 }
 0x23e   : > { %v942_v51 = vpop.permute.xlu1 %941 }
 0x23f   : > { %v962_v6 = vsel %vm430_vm5, %v960_v59, %v942_v51 }
 0x240   : > { %v2721_v2 = vpop.permute.xlu0 %945 }
 0x242   : > { %v948_v5 = vpop.permute.xlu1 %947 }
 0x243   : > { %v964_v11 = vsel %vm433_vm6, %v962_v6, %v948_v5 }
 0x244   : > { %v971_v7 = vmul.f32 %v2734_v9, %v964_v11  ;;  %v2739_v15 = vpop.permute.xlu0 %974 }
 0x246   : > { %v2741_v17 = vadd.f32 %v971_v7, %v902_v12  ;;  %v977_v61 = vpop.permute.xlu1 %976 }
 0x248   : > { %v2743_v20 = vpop.permute.xlu0 %980 }
 0x24a   : > { %v983_v22 = vpop.permute.xlu1 %982 }
 0x24b   : > { %v1023_v58 = vsel %vm415_vm0, %v977_v61, %v983_v22  ;;  %v1673_v22 = vld [vmem:[%s3111_s2 + $0x6] ss:$0 sm:$0xff] }
 0x24c   : > { %v2745_v24 = vpop.permute.xlu0 %986 }
 0x24e   : > { %v989_v23 = vpop.permute.xlu1 %988 }
 0x24f   : > { %v1025_v59 = vsel %vm418_vm1, %v1023_v58, %v989_v23 }
 0x250   : > { %v2747_v28 = vpop.permute.xlu0 %992 }
 0x252   : > { %v1141_v29 = vpop.permute.xlu1 %1140 }
 0x253   : > { %v1143_v32 = vmul.f32 %v1141_v29, %v2750_v31  ;;  %v1144_v35 = vmul.f32 %v1141_v29, %v2753_v25 }
 0x254   : > { %v1162_v26 = vpop.permute.xlu0 %1161 }
 0x255   : > { %v1164_v38 = vmul.f32 %v1162_v26, %v2750_v31  ;;  %v1165_v48 = vmul.f32 %v1162_v26, %v2753_v25  ;;  %1149 = vrot.lane.b32.xlu0 %v1144_v35, %s1956_s27  ;;  %1147 = vrot.lane.b32.xlu1 %v1143_v32, %s1956_s27 }
 0x256   : > { %v995_v41 = vpop.permute.xlu1 %994 }
 0x257   : > { %v1027_v5 = vsel %vm421_vm2, %v1025_v59, %v995_v41 }
 0x258   : > { %v1192_v49 = vpop.permute.xlu0 %1191 }
 0x259   : > { %v1194_v53 = vmul.f32 %v2762_v44, %v1192_v49  ;;  %v1195_v47 = vmul.f32 %v2766_v54, %v1192_v49  ;;  %1170 = vrot.lane.b32.xlu0 %v1165_v48, %s1960_s9  ;;  %1168 = vrot.lane.b32.xlu1 %v1164_v38, %s1960_s9 }
 0x25a   : > { %v1213_v57 = vpop.permute.xlu1 %1212 }
 0x25b   : > { %v1215_v56 = vmul.f32 %v2762_v44, %v1213_v57  ;;  %v1216_v46 = vmul.f32 %v2766_v54, %v1213_v57 }
 0x25c   : > { %v999_v18 = vpop.permute.xlu0 %998 }
 0x25d   : > { %1200 = vrot.lane.b32.xlu0 %v1195_v47, %s1956_s27  ;;  %1198 = vrot.lane.b32.xlu1 %v1194_v53, %s1956_s27  ;;  %v882_v47 = vsel %vm415_vm0, %v2662_v33, %v2669_v34 }
 0x25e   : > { %v1245_v13 = vpop.permute.xlu1 %1244 }
 0x25f   : > { %v1247_v63 = vmul.f32 %v1245_v13, %v2776_v36  ;;  %v1248_v19 = vmul.f32 %v1245_v13, %v2779_v42 }
 0x260   : > { %v1266_v27 = vpop.permute.xlu0 %1265 }
 0x261   : > { %1221 = vrot.lane.b32.xlu0 %v1216_v46, %s1960_s9  ;;  %1219 = vrot.lane.b32.xlu1 %v1215_v56, %s1960_s9  ;;  %v1268_v60 = vmul.f32 %v1266_v27, %v2776_v36  ;;  %v1269_v4 = vmul.f32 %v1266_v27, %v2779_v42  ;;  %v884_v56 = vsel %vm418_vm1, %v882_v47, %v2674_v37 }
 0x262   : > { %v1001_v3 = vpop.permute.xlu1 %1000 }
 0x263   : > { %v1029_v11 = vsel %vm424_vm3, %v1027_v5, %v1001_v3 }
 0x264   : > { %v1005_v51 = vpop.permute.xlu0 %1004 }
 0x265   : > { %1253 = vrot.lane.b32.xlu0 %v1248_v19, %s1956_s27  ;;  %1251 = vrot.lane.b32.xlu1 %v1247_v63, %s1956_s27  ;;  %s1964_s27 = smov 64  }
 0x266   : > { %v1007_v0 = vpop.permute.xlu1 %1006 }
 0x267   : > { %v1031_v7 = vsel %vm427_vm4, %v1029_v11, %v1007_v0 }
 0x268   : > { %v1011_v30 = vpop.permute.xlu0 %1010 }
 0x269   : > { %1274 = vrot.lane.b32.xlu0 %v1269_v4, %s1960_s9  ;;  %1272 = vrot.lane.b32.xlu1 %v1268_v60, %s1960_s9 }
 0x26a   : > { %v1013_v6 = vpop.permute.xlu1 %1012 }
 0x26b   : > { %v1033_v29 = vsel %vm430_vm5, %v1031_v7, %v1013_v6 }
 0x26c   : > { %v1017_v12 = vpop.permute.xlu0 %1016 }
 0x26d   : > { %1089 = vrot.lane.b32.xlu1 %v2356_v16, %s1959_s28  ;;  %v951_v16 = vsel %vm415_vm0, %v2697_v55, %v2699_v50  ;;  %s1965_s28 = smov 80  }
 0x26e   : > { %v1019_v61 = vpop.permute.xlu1 %1018  ;;  %v953_v49 = vsel %vm418_vm1, %v951_v16, %v2701_v1  ;;  %v886_v1 = vsel %vm421_vm2, %v884_v56, %v2679_v21 }
 0x26f   : > { %v1035_v23 = vsel %vm433_vm6, %v1033_v29, %v1019_v61  ;;  %v955_v57 = vsel %vm421_vm2, %v953_v49, %v2703_v45  ;;  %v888_v45 = vsel %vm424_vm3, %v886_v1, %v2684_v40  ;;  %v1676_v61 = vld [vmem:[%s3110_s1 + $0x12] ss:$0 sm:$0xff] }
 0x270   : > { %v1042_v32 = vmul.f32 %v1673_v22, %v1035_v23  ;;  %v1046_v35 = vpop.permute.xlu0 %1045  ;;  %v957_v55 = vsel %vm424_vm3, %v955_v57, %v2705_v14  ;;  %v1132_v23 = vmul.f32 %v1676_v61, %v2750_v31 }
 0x271   : > { %v959_v33 = vsel %vm427_vm4, %v957_v55, %v2707_v10 }
 0x272   : > { %v2804_v26 = vadd.f32 %v1042_v32, %v2741_v17  ;;  %v1022_v17 = vsel %vm415_vm0, %v2739_v15, %v2743_v20  ;;  %v961_v37 = vsel %vm430_vm5, %v959_v33, %v2711_v62  ;;  %v890_v20 = vsel %vm427_vm4, %v888_v45, %v2688_v39  ;;  %v1048_v59 = vpop.permute.xlu1 %1047 }
 0x273   : > { %v1024_v50 = vsel %vm418_vm1, %v1022_v17, %v2745_v24  ;;  %v963_v21 = vsel %vm433_vm6, %v961_v37, %v2721_v2  ;;  %v892_v24 = vsel %vm430_vm5, %v890_v20, %v2693_v52 }
 0x274   : > { %v1052_v38 = vpop.permute.xlu0 %1051  ;;  %v1026_v34 = vsel %vm421_vm2, %v1024_v50, %v2747_v28  ;;  %v894_v40 = vsel %vm433_vm6, %v892_v24, %v2695_v43  ;;  %v970_v46 = vmul.f32 %v2734_v9, %v963_v21  ;;  %v2857_v43 = vld [vmem:[%s3111_s2 + $0x7] ss:$0 sm:$0xff]  ;;  %v1682_v50 = vld [vmem:[%s3110_s1 + $0x18] ss:$0 sm:$0xff] }
 0x275   : > { %v1028_v14 = vsel %vm424_vm3, %v1026_v34, %v999_v18  ;;  %v1093_v18 = vsel %vm415_vm0, %v1046_v35, %v1052_v38  ;;  %v901_v27 = vmul.f32 %v2729_v8, %v894_v40  ;;  %v2865_v8 = vld [vmem:[%s3112_s3 + $0x1] ss:$0 sm:$0xff]  ;;  %v1679_v38 = vld [vmem:[%s3110_s1 + $0x15] ss:$0 sm:$0xff]  ;;  %v1235_v34 = vmul.f32 %v1682_v50, %v2779_v42 }
 0x276   : > { %v1030_v10 = vsel %vm427_vm4, %v1028_v14, %v1005_v51  ;;  %v1054_v6 = vpop.permute.xlu1 %1053  ;;  %v1182_v16 = vmul.f32 %v2766_v54, %v1679_v38  ;;  %v1181_v49 = vmul.f32 %v2762_v44, %v1679_v38  ;;  %v1234_v54 = vmul.f32 %v1682_v50, %v2776_v36 }
 0x277   : > { %v1032_v28 = vsel %vm430_vm5, %v1030_v10, %v1011_v30  ;;  %v972_v3 = vadd.f32 %v970_v46, %v901_v27  ;;  %v1094_v24 = vsel %vm415_vm0, %v1048_v59, %v1054_v6 }
 0x278   : > { %v1058_v48 = vpop.permute.xlu0 %1057  ;;  %v1034_v62 = vsel %vm433_vm6, %v1032_v28, %v1017_v12 }
 0x279   : > { %v1095_v39 = vsel %vm418_vm1, %v1093_v18, %v1058_v48  ;;  %v1041_v52 = vmul.f32 %v1673_v22, %v1034_v62  ;;  %v1133_v22 = vmul.f32 %v1676_v61, %v2753_v25 }
 0x27a   : > { %v1060_v5 = vpop.permute.xlu1 %1059 }
 0x27b   : > { %v1043_v4 = vadd.f32 %v1041_v52, %v972_v3  ;;  %v1096_v62 = vsel %vm418_vm1, %v1094_v24, %v1060_v5 }
 0x27c   : > { %v1064_v41 = vpop.permute.xlu0 %1063 }
 0x27d   : > { %v1097_v2 = vsel %vm421_vm2, %v1095_v39, %v1064_v41 }
 0x27e   : > { %v1066_v11 = vpop.permute.xlu1 %1065 }
 0x27f   : > { %v1098_v42 = vsel %vm421_vm2, %v1096_v62, %v1066_v11 }
 0x280   : > { %v1070_v53 = vpop.permute.xlu0 %1069 }
 0x281   : > { %v1099_v63 = vsel %vm424_vm3, %v1097_v2, %v1070_v53 }
 0x282   : > { %v1072_v12 = vpop.permute.xlu1 %1071 }
 0x284   : > { %v1076_v15 = vpop.permute.xlu0 %1075 }
 0x285   : > { %v1101_v19 = vsel %vm427_vm4, %v1099_v63, %v1076_v15 }
 0x286   : > { %v1078_v7 = vpop.permute.xlu1 %1077 }
 0x288   : > { %v1082_v13 = vpop.permute.xlu0 %1081 }
 0x289   : > { %v1103_v9 = vsel %vm430_vm5, %v1101_v19, %v1082_v13  ;;  %v1100_v13 = vsel %vm424_vm3, %v1098_v42, %v1072_v12 }
 0x28a   : > { %v1084_v29 = vpop.permute.xlu1 %1083  ;;  %v1102_v2 = vsel %vm427_vm4, %v1100_v13, %v1078_v7 }
 0x28b   : > { %v1104_v27 = vsel %vm430_vm5, %v1102_v2, %v1084_v29 }
 0x28c   : > { %v1088_v51 = vpop.permute.xlu0 %1087 }
 0x28d   : > { %v1105_v60 = vsel %vm433_vm6, %v1103_v9, %v1088_v51 }
 0x28e   : > { %v1112_v0 = vmul.f32 %v2857_v43, %v1105_v60 }
 0x290   : > { %v1114_v30 = vadd.f32 %v1112_v0, %v1043_v4 }
 0x292   : > { %v1121_v58 = vadd.f32 %v2865_v8, %v1114_v30 }
 0x294   : > { %1123 = vst [vmem:[%s2666_s10 + $0x8] sm:$0xff] %v1121_v58 }
 0x2c7   : > { %v1150_v32 = vpop.permute.xlu0 %1149  ;;  %v1148_v35 = vpop.permute.xlu1 %1147 }
 0x2c8   : > { %v1154_v48 = vadd.f32 %v1150_v32, %v1133_v22  ;;  %v1153_v41 = vadd.f32 %v1148_v35, %v1132_v23 }
 0x2cb   : > { %v1171_v53 = vpop.permute.xlu0 %1170  ;;  %v1169_v47 = vpop.permute.xlu1 %1168 }
 0x2cc   : > { %v1175_v57 = vadd.f32 %v1171_v53, %v1154_v48  ;;  %v1174_v17 = vadd.f32 %v1169_v47, %v1153_v41 }
 0x2ce   : > { %v1184_v56 = vadd.f32 %v1182_v16, %v1175_v57  ;;  %v1183_v25 = vadd.f32 %v1181_v49, %v1174_v17 }
 0x2cf   : > { %v1201_v55 = vpop.permute.xlu0 %1200  ;;  %v1199_v31 = vpop.permute.xlu1 %1198 }
 0x2d0   : > { %v1205_v1 = vadd.f32 %v1201_v55, %v1184_v56  ;;  %v1204_v33 = vadd.f32 %v1199_v31, %v1183_v25 }
 0x2d3   : > { %v1222_v45 = vpop.permute.xlu0 %1221  ;;  %v1220_v44 = vpop.permute.xlu1 %1219 }
 0x2d4   : > { %v1226_v37 = vadd.f32 %v1222_v45, %v1205_v1  ;;  %v1225_v14 = vadd.f32 %v1220_v44, %v1204_v33 }
 0x2d6   : > { %v1237_v15 = vadd.f32 %v1235_v34, %v1226_v37  ;;  %v1236_v20 = vadd.f32 %v1234_v54, %v1225_v14 }
 0x2d7   : > { %v1254_v21 = vpop.permute.xlu0 %1253  ;;  %v1252_v10 = vpop.permute.xlu1 %1251 }
 0x2d8   : > { %v1258_v28 = vadd.f32 %v1254_v21, %v1237_v15  ;;  %v1257_v40 = vadd.f32 %v1252_v10, %v1236_v20 }
 0x2db   : > { %v1275_v18 = vpop.permute.xlu0 %1274  ;;  %v1273_v46 = vpop.permute.xlu1 %1272 }
 0x2dc   : > { %v2887_v39 = vadd.f32 %v1275_v18, %v1258_v28  ;;  %v2889_v36 = vadd.f32 %v1273_v46, %v1257_v40 }
 0x2de   : > { %1284 = vrot.lane.b32.xlu1 %v2887_v39, %s1961_s23  ;;  %1282 = vrot.lane.b32.xlu0 %v2889_v36, %s1961_s23  ;;  %s1968_s23 = smov 106  }
 0x2df   : > { %v1090_v52 = vpop.permute.xlu1 %1089 }
 0x2e0   : > { %v1106_v63 = vsel %vm433_vm6, %v1104_v27, %v1090_v52 }
 0x2e1   : > { %v1113_v19 = vmul.f32 %v2857_v43, %v1106_v63 }
 0x2e2   : > { %1290 = vrot.lane.b32.xlu1 %v2887_v39, %s1962_s12  ;;  %1288 = vrot.lane.b32.xlu0 %v2889_v36, %s1962_s12  ;;  %s1969_s12 = smov 10  }
 0x2e3   : > { %v1115_v3 = vadd.f32 %v1113_v19, %v2804_v26 }
 0x2e5   : > { %v1122_v9 = vadd.f32 %v2865_v8, %v1115_v3 }
 0x2e6   : > { %1296 = vrot.lane.b32.xlu1 %v2887_v39, %s1963_s6  ;;  %1294 = vrot.lane.b32.xlu0 %v2889_v36, %s1963_s6  ;;  %s1970_s6 = smov 26  }
 0x2e7   : > { %1124 = vst [vmem:[%s2666_s10 + $0x20] sm:$0xff] %v1122_v9 }
 0x2ea   : > { %1302 = vrot.lane.b32.xlu1 %v2887_v39, %s1964_s27  ;;  %1300 = vrot.lane.b32.xlu0 %v2889_v36, %s1964_s27  ;;  %s1971_s27 = smov 42  }
 0x2ee   : > { %1308 = vrot.lane.b32.xlu1 %v2887_v39, %s1965_s28  ;;  %1306 = vrot.lane.b32.xlu0 %v2889_v36, %s1965_s28  ;;  %s1972_s28 = smov 84  }
 0x2f2   : > { %1314 = vrot.lane.b32.xlu1 %v2887_v39, %s1966_s5  ;;  %1312 = vrot.lane.b32.xlu0 %v2889_v36, %s1966_s5  ;;  %s1973_s5 = smov 58  }
 0x2f6   : > { %1320 = vrot.lane.b32.xlu1 %v2887_v39, %s1967_s29  ;;  %1318 = vrot.lane.b32.xlu0 %v2889_v36, %s1967_s29  ;;  %s1975_s29 = smov 116  }
 0x2fa   : > { %1347 = vrot.lane.b32.xlu1 %v2887_v39, %s1968_s23  ;;  %1345 = vrot.lane.b32.xlu0 %v2889_v36, %s1968_s23  ;;  %s1976_s23 = smov 74  }
 0x2fe   : > { %1353 = vrot.lane.b32.xlu1 %v2887_v39, %s1960_s9  ;;  %1351 = vrot.lane.b32.xlu0 %v2889_v36, %s1960_s9  ;;  %s1974_s9 = smov 100  }
 0x302   : > { %1359 = vrot.lane.b32.xlu1 %v2887_v39, %s1969_s12  ;;  %1357 = vrot.lane.b32.xlu0 %v2889_v36, %s1969_s12  ;;  %s1977_s12 = smov 20  }
 0x306   : > { %1365 = vrot.lane.b32.xlu1 %v2887_v39, %s1970_s6  ;;  %1363 = vrot.lane.b32.xlu0 %v2889_v36, %s1970_s6  ;;  %s1982_s6 = smov [#allocation2]  }
 0x30a   : > { %1371 = vrot.lane.b32.xlu1 %v2887_v39, %s1971_s27  ;;  %1369 = vrot.lane.b32.xlu0 %v2889_v36, %s1971_s27  ;;  %s1832_s27 = sshll.u32 %s1982_s6, 4  ;;  %s1833_s27 = int_to_ptr.vmem [resolvable:$false] %s1832_s27 }
 0x30e   : > { %1416 = vrot.lane.b32.xlu1 %v2889_v36, %s1972_s28  ;;  %1375 = vrot.lane.b32.xlu0 %v2889_v36, %s1973_s5 }
 0x312   : > { %1422 = vrot.lane.b32.xlu1 %v2889_v36, %s1974_s9  ;;  %1418 = vrot.lane.b32.xlu0 %v2887_v39, %s1972_s28  ;;  %s1834_s28 = scalar_lea.vmem %s1833_s27, 1536 }
 0x316   : > { %1428 = vrot.lane.b32.xlu1 %v2889_v36, %s1975_s29  ;;  %1424 = vrot.lane.b32.xlu0 %v2887_v39, %s1974_s9 }
 0x31a   : > { %1377 = vrot.lane.b32.xlu1 %v2887_v39, %s1973_s5  ;;  %1430 = vrot.lane.b32.xlu0 %v2887_v39, %s1975_s29 }
 0x31e   : > { %1436 = vrot.lane.b32.xlu1 %v2887_v39, %s1894_s13  ;;  %1434 = vrot.lane.b32.xlu0 %v2889_v36, %s1894_s13  ;;  %s1978_s13 = smov 90  }
 0x322   : > { %1489 = vrot.lane.b32.xlu1 %v2887_v39, %s1903_s11  ;;  %1487 = vrot.lane.b32.xlu0 %v2889_v36, %s1903_s11  ;;  %s1979_s11 = smov 36  }
 0x326   : > { %1495 = vrot.lane.b32.xlu1 %v2887_v39, %s1904_s14  ;;  %1493 = vrot.lane.b32.xlu0 %v2889_v36, %s1904_s14  ;;  %s1980_s14 = smov 52  }
 0x32a   : > { %1383 = vrot.lane.b32.xlu1 %v2887_v39, %s1976_s23  ;;  %1381 = vrot.lane.b32.xlu0 %v2889_v36, %s1976_s23 }
 0x32e   : > { %1442 = vrot.lane.b32.xlu1 %v2887_v39, %s1977_s12  ;;  %1440 = vrot.lane.b32.xlu0 %v2889_v36, %s1977_s12  ;;  %s1695_s12 = smul.u32 768, %s2030_s19  ;;  %s3067_s19 = scalar_lea.sflag [#allocation3], %s188_s8 }
 0x332   : > { %1501 = vrot.lane.b32.xlu1 %v2887_v39, %s1905_s20  ;;  %1499 = vrot.lane.b32.xlu0 %v2889_v36, %s1905_s20  ;;  %s1981_s20 = smov 68  }
 0x336   : > { %1389 = vrot.lane.b32.xlu1 %v2887_v39, %s1978_s13  ;;  %1387 = vrot.lane.b32.xlu0 %v2889_v36, %s1978_s13 }
 0x33a   : > { %1448 = vrot.lane.b32.xlu1 %v2887_v39, %s1979_s11  ;;  %1446 = vrot.lane.b32.xlu0 %v2889_v36, %s1979_s11 }
 0x33e   : > { %1507 = vrot.lane.b32.xlu1 %v2887_v39, %s1906_s22  ;;  %1505 = vrot.lane.b32.xlu0 %v2889_v36, %s1906_s22  ;;  %s3121_s22 = smov 30  }
 0x342   : > { %1454 = vrot.lane.b32.xlu1 %v2887_v39, %s1980_s14  ;;  %1452 = vrot.lane.b32.xlu0 %v2889_v36, %s1980_s14  ;;  %s1581_s14 = sshll.u32 %s2666_s10, 4  ;;  %s3061_s14 = int_to_ptr.vmem [resolvable:$true] %s1581_s14 }
 0x343   : > { %p1835_p0 = scmp.lt.s32.totalorder %s3061_s14, %s1833_s27 }
 0x346   : > { %1513 = vrot.lane.b32.xlu1 %v2887_v39, %s1898_s30  ;;  %1511 = vrot.lane.b32.xlu0 %v2889_v36, %s1898_s30  ;;  %s3122_s30 = smov 46  }
 0x34a   : > { %1460 = vrot.lane.b32.xlu1 %v2887_v39, %s1981_s20  ;;  %1458 = vrot.lane.b32.xlu0 %v2889_v36, %s1981_s20 }
 0x34e   : > { %1519 = vrot.lane.b32.xlu1 %v2887_v39, %s1900_s7  ;;  %1517 = vrot.lane.b32.xlu0 %v2889_v36, %s1900_s7  ;;  %s1828_s7 = scalar_lea.vmem %s3061_s14, 768 }
 0x34f   : > { %p1829_p11 = scmp.ne.s32.totalorder %s3061_s14, %s1828_s7  ;;  %p1836_p1 = scmp.lt.s32.totalorder %s1834_s28, %s1828_s7 }
 0x350   : > { %v1283_v26 = vpop.permute.xlu0 %1282  ;;  %v1285_v43 = vpop.permute.xlu1 %1284 }
 0x351   : > { %v1324_v51 = vsel %vm415_vm0, %v2889_v36, %v1283_v26  ;;  %v1325_v60 = vsel %vm415_vm0, %v2887_v39, %v1285_v43  ;;  %p1830_p12 = pnand %p1829_p11, %p2047_p5  ;;  %p1837_p2 = por %p1836_p1, %p1835_p0 }
 0x352   : > { %1525 = vrot.lane.b32.xlu1 %v2887_v39, %s3121_s22  ;;  %1523 = vrot.lane.b32.xlu0 %v2889_v36, %s3121_s22 }
 0x353   : > { %p1831_p13 = pneg %p1830_p12 }
 0x354   : > { %v1289_v4 = vpop.permute.xlu0 %1288  ;;  %v1291_v0 = vpop.permute.xlu1 %1290 }
 0x355   : > { %v1326_v8 = vsel %vm418_vm1, %v1324_v51, %v1289_v4  ;;  %v1327_v30 = vsel %vm418_vm1, %v1325_v60, %v1291_v0  ;;  %v1685_v60 = vld [vmem:[%s3111_s2 + $0x8] ss:$0 sm:$0xff]  ;;  %v1686_v0 = vld [vmem:[%s3111_s2 + $0x9] ss:$0 sm:$0xff]  ;;  %p1838_p3 = pnand %p1837_p2, %p1831_p13 }
 0x356   : > { %1531 = vrot.lane.b32.xlu1 %v2887_v39, %s3122_s30  ;;  %1529 = vrot.lane.b32.xlu0 %v2889_v36, %s3122_s30  ;;  %s3059_s30 = scalar_lea.hbm %s3113_s4, %s1695_s12 }
 0x358   : > { %v1295_v58 = vpop.permute.xlu0 %1294  ;;  %v1297_v59 = vpop.permute.xlu1 %1296 }
 0x359   : > { %v1328_v6 = vsel %vm421_vm2, %v1326_v8, %v1295_v58  ;;  %v1329_v5 = vsel %vm421_vm2, %v1327_v30, %v1297_v59 }
 0x35c   : > { %v1301_v11 = vpop.permute.xlu0 %1300  ;;  %v1303_v12 = vpop.permute.xlu1 %1302 }
 0x35d   : > { %v1330_v7 = vsel %vm424_vm3, %v1328_v6, %v1301_v11  ;;  %v1331_v29 = vsel %vm424_vm3, %v1329_v5, %v1303_v12 }
 0x360   : > { %v1307_v61 = vpop.permute.xlu0 %1306  ;;  %v1309_v22 = vpop.permute.xlu1 %1308 }
 0x361   : > { %v1332_v23 = vsel %vm427_vm4, %v1330_v7, %v1307_v61  ;;  %v1333_v32 = vsel %vm427_vm4, %v1331_v29, %v1309_v22 }
 0x364   : > { %v1313_v35 = vpop.permute.xlu0 %1312  ;;  %v1315_v38 = vpop.permute.xlu1 %1314 }
 0x365   : > { %v1334_v48 = vsel %vm430_vm5, %v1332_v23, %v1313_v35  ;;  %v1335_v41 = vsel %vm430_vm5, %v1333_v32, %v1315_v38 }
 0x368   : > { %v1319_v16 = vpop.permute.xlu0 %1318  ;;  %v1321_v49 = vpop.permute.xlu1 %1320 }
 0x369   : > { %v1336_v53 = vsel %vm433_vm6, %v1334_v48, %v1319_v16  ;;  %v1337_v47 = vsel %vm433_vm6, %v1335_v41, %v1321_v49 }
 0x36a   : > { %v1343_v11 = vmul.f32 %v1685_v60, %v1336_v53  ;;  %v1344_v12 = vmul.f32 %v1685_v60, %v1337_v47 }
 0x36c   : > { %v1346_v57 = vpop.permute.xlu0 %1345  ;;  %v1348_v17 = vpop.permute.xlu1 %1347 }
 0x370   : > { %v1352_v56 = vpop.permute.xlu0 %1351  ;;  %v1354_v25 = vpop.permute.xlu1 %1353 }
 0x371   : > { %v1393_v55 = vsel %vm415_vm0, %v1346_v57, %v1352_v56  ;;  %v1394_v31 = vsel %vm415_vm0, %v1348_v17, %v1354_v25  ;;  %v1687_v25 = vld [vmem:[%s3111_s2 + $0xa] ss:$0 sm:$0xff] }
 0x374   : > { %v1358_v50 = vpop.permute.xlu0 %1357  ;;  %v1360_v1 = vpop.permute.xlu1 %1359 }
 0x375   : > { %v1395_v33 = vsel %vm418_vm1, %v1393_v55, %v1358_v50  ;;  %v1396_v34 = vsel %vm418_vm1, %v1394_v31, %v1360_v1 }
 0x378   : > { %v1364_v54 = vpop.permute.xlu0 %1363  ;;  %v1366_v45 = vpop.permute.xlu1 %1365 }
 0x379   : > { %v1397_v44 = vsel %vm421_vm2, %v1395_v33, %v1364_v54  ;;  %v1398_v37 = vsel %vm421_vm2, %v1396_v34, %v1366_v45 }
 0x37c   : > { %v1370_v14 = vpop.permute.xlu0 %1369  ;;  %v1372_v15 = vpop.permute.xlu1 %1371 }
 0x37d   : > { %v1399_v20 = vsel %vm424_vm3, %v1397_v44, %v1370_v14  ;;  %v1400_v21 = vsel %vm424_vm3, %v1398_v37, %v1372_v15 }
 0x380   : > { %v1376_v10 = vpop.permute.xlu0 %1375  ;;  %v1417_v24 = vpop.permute.xlu1 %1416 }
 0x381   : > { %v1401_v28 = vsel %vm427_vm4, %v1399_v20, %v1376_v10 }
 0x384   : > { %v1419_v40 = vpop.permute.xlu0 %1418  ;;  %v1423_v62 = vpop.permute.xlu1 %1422 }
 0x385   : > { %v1464_v16 = vsel %vm415_vm0, %v1417_v24, %v1423_v62 }
 0x388   : > { %v1425_v18 = vpop.permute.xlu0 %1424  ;;  %v1429_v46 = vpop.permute.xlu1 %1428 }
 0x389   : > { %v1466_v49 = vsel %vm418_vm1, %v1464_v16, %v1429_v46  ;;  %v1465_v1 = vsel %vm415_vm0, %v1419_v40, %v1425_v18 }
 0x38c   : > { %v1431_v42 = vpop.permute.xlu0 %1430  ;;  %v1378_v39 = vpop.permute.xlu1 %1377 }
 0x38d   : > { %v1402_v4 = vsel %vm427_vm4, %v1400_v21, %v1378_v39  ;;  %v1467_v34 = vsel %vm418_vm1, %v1465_v1, %v1431_v42 }
 0x390   : > { %v1435_v36 = vpop.permute.xlu0 %1434  ;;  %v1437_v13 = vpop.permute.xlu1 %1436 }
 0x391   : > { %v1468_v56 = vsel %vm421_vm2, %v1466_v49, %v1435_v36  ;;  %v1469_v45 = vsel %vm421_vm2, %v1467_v34, %v1437_v13 }
 0x394   : > { %v1488_v2 = vpop.permute.xlu0 %1487  ;;  %v1490_v27 = vpop.permute.xlu1 %1489 }
 0x398   : > { %v1494_v52 = vpop.permute.xlu0 %1493  ;;  %v1496_v63 = vpop.permute.xlu1 %1495 }
 0x399   : > { %v1535_v10 = vsel %vm415_vm0, %v1488_v2, %v1494_v52  ;;  %v1536_v24 = vsel %vm415_vm0, %v1490_v27, %v1496_v63  ;;  %v1688_v63 = vld [vmem:[%s3111_s2 + $0xb] ss:$0 sm:$0xff] }
 0x39c   : > { %v1382_v19 = vpop.permute.xlu0 %1381  ;;  %v1384_v3 = vpop.permute.xlu1 %1383 }
 0x39d   : > { %v1403_v8 = vsel %vm430_vm5, %v1401_v28, %v1382_v19  ;;  %v1404_v30 = vsel %vm430_vm5, %v1402_v4, %v1384_v3 }
 0x3a0   : > { %v1441_v9 = vpop.permute.xlu0 %1440  ;;  %v1443_v26 = vpop.permute.xlu1 %1442 }
 0x3a1   : > { %v1470_v53 = vsel %vm424_vm3, %v1468_v56, %v1441_v9  ;;  %v1471_v44 = vsel %vm424_vm3, %v1469_v45, %v1443_v26 }
 0x3a4   : > { %v1500_v43 = vpop.permute.xlu0 %1499  ;;  %v1502_v51 = vpop.permute.xlu1 %1501 }
 0x3a5   : > { %v1537_v40 = vsel %vm418_vm1, %v1535_v10, %v1500_v43  ;;  %v1538_v62 = vsel %vm418_vm1, %v1536_v24, %v1502_v51 }
 0x3a8   : > { %v1388_v58 = vpop.permute.xlu0 %1387  ;;  %v1390_v59 = vpop.permute.xlu1 %1389 }
 0x3a9   : > { %v1405_v6 = vsel %vm433_vm6, %v1403_v8, %v1388_v58  ;;  %v1406_v5 = vsel %vm433_vm6, %v1404_v30, %v1390_v59  ;;  %v1689_v8 = vld [vmem:[%s3112_s3 + $0x2] ss:$0 sm:$0xff] }
 0x3aa   : > { %v1412_v7 = vmul.f32 %v1686_v0, %v1405_v6  ;;  %v1413_v29 = vmul.f32 %v1686_v0, %v1406_v5 }
 0x3ac   : > { %v1414_v61 = vadd.f32 %v1412_v7, %v1343_v11  ;;  %v1415_v22 = vadd.f32 %v1413_v29, %v1344_v12  ;;  %v1447_v23 = vpop.permute.xlu0 %1446  ;;  %v1449_v32 = vpop.permute.xlu1 %1448 }
 0x3ad   : > { %v1472_v47 = vsel %vm427_vm4, %v1470_v53, %v1447_v23  ;;  %v1473_v20 = vsel %vm427_vm4, %v1471_v44, %v1449_v32 }
 0x3b0   : > { %v1506_v35 = vpop.permute.xlu0 %1505  ;;  %v1508_v38 = vpop.permute.xlu1 %1507 }
 0x3b1   : > { %v1539_v42 = vsel %vm421_vm2, %v1537_v40, %v1506_v35  ;;  %v1540_v39 = vsel %vm421_vm2, %v1538_v62, %v1508_v38 }
 0x3b4   : > { %v1453_v48 = vpop.permute.xlu0 %1452  ;;  %v1455_v41 = vpop.permute.xlu1 %1454 }
 0x3b5   : > { %v1474_v55 = vsel %vm430_vm5, %v1472_v47, %v1453_v48  ;;  %v1475_v21 = vsel %vm430_vm5, %v1473_v20, %v1455_v41 }
 0x3b8   : > { %v1512_v57 = vpop.permute.xlu0 %1511  ;;  %v1514_v17 = vpop.permute.xlu1 %1513 }
 0x3b9   : > { %v1541_v36 = vsel %vm424_vm3, %v1539_v42, %v1512_v57  ;;  %v1542_v13 = vsel %vm424_vm3, %v1540_v39, %v1514_v17 }
 0x3bc   : > { %v1459_v31 = vpop.permute.xlu0 %1458  ;;  %v1461_v50 = vpop.permute.xlu1 %1460 }
 0x3bd   : > { %v1476_v33 = vsel %vm433_vm6, %v1474_v55, %v1459_v31  ;;  %v1477_v28 = vsel %vm433_vm6, %v1475_v21, %v1461_v50 }
 0x3be   : > { %v1483_v54 = vmul.f32 %v1687_v25, %v1476_v33  ;;  %v1484_v2 = vmul.f32 %v1687_v25, %v1477_v28 }
 0x3c0   : > { %v1485_v37 = vadd.f32 %v1483_v54, %v1414_v61  ;;  %v1518_v14 = vpop.permute.xlu0 %1517  ;;  %v1520_v15 = vpop.permute.xlu1 %1519  ;;  %v1486_v60 = vadd.f32 %v1484_v2, %v1415_v22 }
 0x3c1   : > { %v1543_v27 = vsel %vm427_vm4, %v1541_v36, %v1518_v14  ;;  %v1544_v52 = vsel %vm427_vm4, %v1542_v13, %v1520_v15 }
 0x3c4   : > { %v1524_v18 = vpop.permute.xlu0 %1523  ;;  %v1526_v46 = vpop.permute.xlu1 %1525 }
 0x3c5   : > { %v1545_v19 = vsel %vm430_vm5, %v1543_v27, %v1524_v18  ;;  %v1546_v3 = vsel %vm430_vm5, %v1544_v52, %v1526_v46 }
 0x3c8   : > { %v1530_v9 = vpop.permute.xlu0 %1529  ;;  %v1532_v26 = vpop.permute.xlu1 %1531 }
 0x3c9   : > { %v1547_v43 = vsel %vm433_vm6, %v1545_v19, %v1530_v9  ;;  %v1548_v51 = vsel %vm433_vm6, %v1546_v3, %v1532_v26 }
 0x3ca   : > { %v1554_v4 = vmul.f32 %v1688_v63, %v1547_v43  ;;  %v1555_v0 = vmul.f32 %v1688_v63, %v1548_v51 }
 0x3cc   : > { %v1556_v30 = vadd.f32 %v1554_v4, %v1485_v37  ;;  %v1557_v58 = vadd.f32 %v1555_v0, %v1486_v60 }
 0x3ce   : > { %v1563_v59 = vadd.f32 %v1689_v8, %v1556_v30  ;;  %v1564_v6 = vadd.f32 %v1689_v8, %v1557_v58 }
 0x3d0   : > { %1565 = vst [vmem:[%s2666_s10 + $0x10] sm:$0xff] %v1563_v59  ;;  %1566 = vst [vmem:[%s2666_s10 + $0x28] sm:$0xff] %v1564_v6 }
 0x3d1   : > { %1841 = shalt.err (!%p1838_p3)
}
 0x3d2   : > { %s1842_s8 = scalar_lea.hbm %s3059_s30, 768  ;;  %s1846_s9 = scalar_lea.hbm %s3113_s4, 1536 }
 0x3d3   : > { %p1843_p4 = scmp.ne.s32.totalorder %s3059_s30, %s1842_s8  ;;  %p1847_p9 = scmp.lt.u32.totalorder %s3059_s30, %s3113_s4 }
 0x3d4   : > { %p1848_p10 = scmp.lt.u32.totalorder %s1846_s9, %s1842_s8  ;;  %p1850_p12 = scmp.lt.u32.totalorder %s1842_s8, %s3059_s30 }
 0x3d5   : > { %p1844_p7 = pnand %p1843_p4, %p2047_p5 }
 0x3d6   : > { %p1849_p11 = por %p1848_p10, %p1847_p9 }
 0x3d7   : > { %p1845_p8 = pneg %p1844_p7 }
 0x3d8   : > { %p1851_p13 = por %p1850_p12, %p1849_p11 }
 0x3da   : > { %p1852_p0 = pnand %p1851_p13, %p1845_p8 }
 0x3dc   : > { %1855 = shalt.err (!%p1852_p0)
}
 0x3dd   : > { %s1983_s12 = smov 384   ;;  %s3123_s13 = smov 24  }
 0x3de   : > { %1696 = dma.vmem_to_hbm [thread:$0]  (%p2047_p5), %s3061_s14, 768, %s3059_s30, %s3067_s19, %s1983_s12, %s1983_s12, %s3123_s13  }
 0x3df PF: > { %p1702_p1 = scmp.ge.s32.totalorder %s1890_s18, 2  ;;  %s1596_s11 = sand.u32 1, %s1878_s15  }
 0x3e0   : > { %s1597_s20 = scalar_lea.sflag [#allocation3], %s1596_s11 }
 0x3e1   : > { %p1699_p2 = pnand %p1702_p1, %p2051_p6 }
 0x3e3   : > { %1873 = dma.done.wait (!%p1699_p2), %s1597_s20, 768  }
 0x3e4   : > { %1875 = vsyncadd (!%p1699_p2), %s1597_s20, 4294966528  ;;  %p14_p3 = scmp.ge.s32.totalorder %s2034_s21, 4   ;;  %s3124_s15 = smov %s1882_s16 }
 0x3e5   : > { %s3125_s16 = smov %s1886_s17  ;;  %s3126_s17 = smov %s2045_s24 }
 0x3e6   : > { %s3127_s18 = smov %s2034_s21  ;;  %16 = sbr.rel (!%p14_p3) target bundleno = 3 (0x3), region = 71 }
 0x3ed   :  { %1602 = vsyncpa [#allocation3], 1 }
 0x3ee   :  { %1604 = vsyncpa [#allocation3 + $0x1], 1 }

</bundles_post_ra>
